<compile_context>
chip_gen: v5e
topology: v5e:2x2
jax: 0.10.0
libtpu: 0.0.40
codegen_flags: <defaults>
</compile_context>

<pallas_src>
import jax
import jax.numpy as jnp
from jax.experimental import pallas as pl
from jax.experimental.pallas import tpu as pltpu


def _gru_encoder_kernel(x_ref, len_ref,
                        wir_ref, wiz_ref, win_ref,
                        whr_ref, whz_ref, whn_ref,
                        br_ref, bz_ref, bin_ref, bhn_ref,
                        gamma_ref, beta_ref,
                        out_ref, hid_ref,
                        h_scr, gir_scr, giz_scr, gin_scr):
    Tc, Bt, H = x_ref.shape
    t_idx = pl.program_id(1)

    # New batch tile -> reset the carried hidden state.
    @pl.when(t_idx == 0)
    def _():
        h_scr[...] = jnp.zeros_like(h_scr)

    # ---- hoisted input projection: one big MXU matmul per gate per chunk ----
    x2 = x_ref[...].reshape(Tc * Bt, H)
    gir_scr[...] = (jnp.dot(x2, wir_ref[...], preferred_element_type=jnp.float32)
                    + br_ref[...]).reshape(Tc, Bt, H)
    giz_scr[...] = (jnp.dot(x2, wiz_ref[...], preferred_element_type=jnp.float32)
                    + bz_ref[...]).reshape(Tc, Bt, H)
    gin_scr[...] = (jnp.dot(x2, win_ref[...], preferred_element_type=jnp.float32)
                    + bin_ref[...]).reshape(Tc, Bt, H)

    # ---- loop-invariant values (hoisted loads / broadcasts) ----
    whr = whr_ref[...]
    whz = whz_ref[...]
    whn = whn_ref[...]
    bhn = jnp.broadcast_to(bhn_ref[...], (Bt, H))
    gamma = jnp.broadcast_to(gamma_ref[...], (Bt, H))
    beta = jnp.broadcast_to(beta_ref[...], (Bt, H))
    lens = len_ref[...]                       # (Bt, 1) int32
    t0 = t_idx * Tc

    def step(i, h):
        # Only the serial-dependent recurrent matmuls remain in the loop.
        gh_r = jnp.dot(h, whr, preferred_element_type=jnp.float32)
        gh_z = jnp.dot(h, whz, preferred_element_type=jnp.float32)
        gh_n = jnp.dot(h, whn, preferred_element_type=jnp.float32) + bhn
        r = jax.nn.sigmoid(gir_scr[i] + gh_r)
        z = jax.nn.sigmoid(giz_scr[i] + gh_z)
        n = jnp.tanh(gin_scr[i] + r * gh_n)
        h_new = (1.0 - z) * n + z * h

        valid = (t0 + i) < lens               # (Bt, 1): packed-sequence mask
        h_next = jnp.where(valid, h_new, h)   # freeze hidden after length
        out_t = jnp.where(valid, h_new, 0.0)  # pad_packed_sequence -> zeros

        # Fused LayerNorm (eps=1e-5) + residual, streamed to the output block.
        mean = jnp.mean(out_t, axis=-1, keepdims=True)
        var = jnp.mean((out_t - mean) ** 2, axis=-1, keepdims=True)
        ln = (out_t - mean) * jax.lax.rsqrt(var + 1e-5) * gamma + beta
        out_ref[i] = x_ref[i] + ln
        return h_next

    h = jax.lax.fori_loop(0, Tc, step, h_scr[...], unroll=4)
    h_scr[...] = h

    @pl.when(t_idx == pl.num_programs(1) - 1)
    def _():
        hid_ref[0] = h


def rnmt_plus_encoder_layer(inputs, input_lengths, params, *,
                            b_tile=None, t_chunk=None):
    """inputs: (B, T, H) f32 (batch_first), input_lengths: (B,) sorted desc."""
    B, T, H = inputs.shape
    if b_tile is None:
        b_tile = 8 if (B > 8 and B % 8 == 0) else B
    if t_chunk is None:
        t_chunk = max(c for c in range(1, min(T, 64) + 1) if T % c == 0)
    assert B % b_tile == 0 and T % t_chunk == 0
    assert b_tile == B or b_tile % 8 == 0, "batch tile must be full B or multiple of 8"

    # Time-major inside the kernel: leading-axis per-step slices are free views.
    x_tm = jnp.transpose(inputs, (1, 0, 2)).astype(jnp.float32)
    lens = input_lengths.reshape(B, 1).astype(jnp.int32)

    # Split packed PyTorch GRU weights into lane-dense per-gate (H, H) matrices
    # (gate order [r, z, n]) and pre-transpose for x @ W^T / h @ W^T.
    w_ih, w_hh = params["w_ih"], params["w_hh"]
    b_ih, b_hh = params["b_ih"], params["b_hh"]
    w_ir_t, w_iz_t, w_in_t = w_ih[0:H].T, w_ih[H:2 * H].T, w_ih[2 * H:].T
    w_hr_t, w_hz_t, w_hn_t = w_hh[0:H].T, w_hh[H:2 * H].T, w_hh[2 * H:].T
    # b_hr / b_hz fold into the hoisted input projection; b_hn cannot
    # (it sits inside r * (W_hn h + b_hn)).
    b_r = (b_ih[0:H] + b_hh[0:H]).reshape(1, H)
    b_z = (b_ih[H:2 * H] + b_hh[H:2 * H]).reshape(1, H)
    b_n_i = b_ih[2 * H:].reshape(1, H)
    b_n_h = b_hh[2 * H:].reshape(1, H)
    gamma = params["ln_gamma"].reshape(1, H)
    beta = params["ln_beta"].reshape(1, H)

    grid = (B // b_tile, T // t_chunk)
    resident = lambda shape: pl.BlockSpec(shape, lambda b, t: (0,) * len(shape))

    out_tm, hidden = pl.pallas_call(
        _gru_encoder_kernel,
        out_shape=(jax.ShapeDtypeStruct((T, B, H), jnp.float32),
                   jax.ShapeDtypeStruct((1, B, H), jnp.float32)),
        grid_spec=pltpu.PrefetchScalarGridSpec(
            num_scalar_prefetch=0,
            grid=grid,
            in_specs=[
                pl.BlockSpec((t_chunk, b_tile, H), lambda b, t: (t, b, 0)),
                pl.BlockSpec((b_tile, 1), lambda b, t: (b, 0)),
                resident((H, H)), resident((H, H)), resident((H, H)),
                resident((H, H)), resident((H, H)), resident((H, H)),
                resident((1, H)), resident((1, H)), resident((1, H)),
                resident((1, H)), resident((1, H)), resident((1, H)),
            ],
            out_specs=[
                pl.BlockSpec((t_chunk, b_tile, H), lambda b, t: (t, b, 0)),
                pl.BlockSpec((1, b_tile, H), lambda b, t: (0, b, 0)),
            ],
            scratch_shapes=[
                pltpu.VMEM((b_tile, H), jnp.float32),            # h carry
                pltpu.VMEM((t_chunk, b_tile, H), jnp.float32),   # gi_r
                pltpu.VMEM((t_chunk, b_tile, H), jnp.float32),   # gi_z
                pltpu.VMEM((t_chunk, b_tile, H), jnp.float32),   # gi_n
            ]),
        compiler_params=pltpu.CompilerParams(
            dimension_semantics=("parallel", "arbitrary")),
    )(x_tm, lens,
      w_ir_t, w_iz_t, w_in_t, w_hr_t, w_hz_t, w_hn_t,
      b_r, b_z, b_n_i, b_n_h, gamma, beta)

    output = jnp.transpose(out_tm, (1, 0, 2))       # back to batch-major
    cell = jnp.zeros((1, B, H), jnp.float32)        # GRU: cell is identically zero
    return output, hidden, cell


def _reference(inputs, input_lengths, params):
    """Pure-JAX reference of the PyTorch forward (eval-mode dropout)."""
    B, T, H = inputs.shape
    wih_t, whh_t = params["w_ih"].T, params["w_hh"].T
    bih, bhh = params["b_ih"], params["b_hh"]

    def step(h, xs):
        x_t, t = xs
        gi = x_t @ wih_t + bih
        gh = h @ whh_t + bhh
        r = jax.nn.sigmoid(gi[:, :H] + gh[:, :H])
        z = jax.nn.sigmoid(gi[:, H:2 * H] + gh[:, H:2 * H])
        n = jnp.tanh(gi[:, 2 * H:] + r * gh[:, 2 * H:])
        h_new = (1.0 - z) * n + z * h
        valid = (t < input_lengths)[:, None]
        h_next = jnp.where(valid, h_new, h)
        out_t = jnp.where(valid, h_new, 0.0)
        return h_next, out_t

    h0 = jnp.zeros((B, H), jnp.float32)
    h_final, outs = jax.lax.scan(
        step, h0, (jnp.swapaxes(inputs, 0, 1), jnp.arange(T)))
    outs = jnp.swapaxes(outs, 0, 1)
    mean = jnp.mean(outs, axis=-1, keepdims=True)
    var = jnp.mean((outs - mean) ** 2, axis=-1, keepdims=True)
    ln = (outs - mean) / jnp.sqrt(var + 1e-5)
    ln = ln * params["ln_gamma"] + params["ln_beta"]
    return inputs + ln, h_final[None], jnp.zeros((1, B, H), jnp.float32)


if __name__ == "__main__":
    def make_params(key, H):
        k_wih, k_whh, k_bih, k_bhh = jax.random.split(key, 4)
        return {
            "w_ih": jax.random.uniform(k_wih, (3 * H, H), jnp.float32, -0.1, 0.1),
            "w_hh": jax.random.uniform(k_whh, (3 * H, H), jnp.float32, -0.1, 0.1),
            "b_ih": jax.random.uniform(k_bih, (3 * H,), jnp.float32, -0.1, 0.1),
            "b_hh": jax.random.uniform(k_bhh, (3 * H,), jnp.float32, -0.1, 0.1),
            "ln_gamma": jnp.ones((H,), jnp.float32),   # nn.LayerNorm defaults
            "ln_beta": jnp.zeros((H,), jnp.float32),
        }

    key = jax.random.PRNGKey(0)

    # --- small test: B=2, T=8, H=32 (two time chunks, one batch tile) ---
    B, T, H = 2, 8, 32
    k_x, k_p, key = jax.random.split(key, 3)
    inputs = jax.random.normal(k_x, (B, T, H), dtype=jnp.float32)
    input_lengths = jnp.array([8, 5], dtype=jnp.int32)   # sorted descending
    params = make_params(k_p, H)

    out, hidden, cell = jax.block_until_ready(
        rnmt_plus_encoder_layer(inputs, input_lengths, params, t_chunk=4))
    ref_out, ref_hidden, ref_cell = _reference(inputs, input_lengths, params)
    assert out.shape == (B, T, H) and hidden.shape == (1, B, H)
    assert jnp.allclose(out, ref_out, atol=1e-5, rtol=1e-5)
    assert jnp.allclose(hidden, ref_hidden, atol=1e-5, rtol=1e-5)
    assert jnp.allclose(cell, ref_cell)

    # --- larger test: exercises batch tiling (2 batch tiles x 4 time chunks) ---
    B, T, H = 16, 16, 128
    k_x, k_p, key = jax.random.split(key, 3)
    inputs = jax.random.normal(k_x, (B, T, H), dtype=jnp.float32)
    input_lengths = jnp.maximum(T - jnp.arange(B), 1).astype(jnp.int32)  # descending
    params = make_params(k_p, H)

    out, hidden, cell = jax.block_until_ready(
        rnmt_plus_encoder_layer(inputs, input_lengths, params,
                                b_tile=8, t_chunk=4))
    ref_out, ref_hidden, ref_cell = _reference(inputs, input_lengths, params)
    assert jnp.allclose(out, ref_out, atol=1e-4, rtol=1e-4)
    assert jnp.allclose(hidden, ref_hidden, atol=1e-4, rtol=1e-4)
    assert jnp.allclose(cell, ref_cell)

    print("KERNEL_OK")
</pallas_src>

<mosaic_0001>
module attributes {stable_mosaic.version = 11 : i64} {
  func.func @_gru_encoder_kernel(%arg0: i32, %arg1: i32, %arg2: memref<4x2x32xf32, #tpu.memory_space<vmem>>, %arg3: memref<2x1xi32, #tpu.memory_space<vmem>>, %arg4: memref<32x32xf32, #tpu.memory_space<vmem>>, %arg5: memref<32x32xf32, #tpu.memory_space<vmem>>, %arg6: memref<32x32xf32, #tpu.memory_space<vmem>>, %arg7: memref<32x32xf32, #tpu.memory_space<vmem>>, %arg8: memref<32x32xf32, #tpu.memory_space<vmem>>, %arg9: memref<32x32xf32, #tpu.memory_space<vmem>>, %arg10: memref<1x32xf32, #tpu.memory_space<vmem>>, %arg11: memref<1x32xf32, #tpu.memory_space<vmem>>, %arg12: memref<1x32xf32, #tpu.memory_space<vmem>>, %arg13: memref<1x32xf32, #tpu.memory_space<vmem>>, %arg14: memref<1x32xf32, #tpu.memory_space<vmem>>, %arg15: memref<1x32xf32, #tpu.memory_space<vmem>>, %arg16: memref<4x2x32xf32, #tpu.memory_space<vmem>>, %arg17: memref<1x2x32xf32, #tpu.memory_space<vmem>>, %arg18: memref<2x32xf32, #tpu.memory_space<vmem>>, %arg19: memref<4x2x32xf32, #tpu.memory_space<vmem>>, %arg20: memref<4x2x32xf32, #tpu.memory_space<vmem>>, %arg21: memref<4x2x32xf32, #tpu.memory_space<vmem>>) attributes {dimension_semantics = [#tpu.dimension_semantics<parallel>, #tpu.dimension_semantics<arbitrary>], iteration_bounds = array<i64: 1, 2>, scalar_prefetch = 0 : i64, scratch_operands = 4 : i64, tpu.core_type = #tpu.core_type<tc>, window_params = [{transform_indices = @transform_0, window_bounds = array<i64: 4, 2, 32>}, {transform_indices = @transform_1, window_bounds = array<i64: 2, 1>}, {pipeline_mode = #tpu.pipeline_mode<synchronous>, transform_indices = @transform_2, window_bounds = array<i64: 32, 32>}, {pipeline_mode = #tpu.pipeline_mode<synchronous>, transform_indices = @transform_3, window_bounds = array<i64: 32, 32>}, {pipeline_mode = #tpu.pipeline_mode<synchronous>, transform_indices = @transform_4, window_bounds = array<i64: 32, 32>}, {pipeline_mode = #tpu.pipeline_mode<synchronous>, transform_indices = @transform_5, window_bounds = array<i64: 32, 32>}, {pipeline_mode = #tpu.pipeline_mode<synchronous>, transform_indices = @transform_6, window_bounds = array<i64: 32, 32>}, {pipeline_mode = #tpu.pipeline_mode<synchronous>, transform_indices = @transform_7, window_bounds = array<i64: 32, 32>}, {pipeline_mode = #tpu.pipeline_mode<synchronous>, transform_indices = @transform_8, window_bounds = array<i64: 1, 32>}, {pipeline_mode = #tpu.pipeline_mode<synchronous>, transform_indices = @transform_9, window_bounds = array<i64: 1, 32>}, {pipeline_mode = #tpu.pipeline_mode<synchronous>, transform_indices = @transform_10, window_bounds = array<i64: 1, 32>}, {pipeline_mode = #tpu.pipeline_mode<synchronous>, transform_indices = @transform_11, window_bounds = array<i64: 1, 32>}, {pipeline_mode = #tpu.pipeline_mode<synchronous>, transform_indices = @transform_12, window_bounds = array<i64: 1, 32>}, {pipeline_mode = #tpu.pipeline_mode<synchronous>, transform_indices = @transform_13, window_bounds = array<i64: 1, 32>}, {transform_indices = @transform_14, window_bounds = array<i64: 4, 2, 32>}, {transform_indices = @transform_15, window_bounds = array<i64: 1, 2, 32>}]} {
    %c0_i32 = arith.constant 0 : i32
    %0 = arith.cmpi eq, %arg1, %c0_i32 : i32
    %1 = arith.extui %0 : i1 to i32
    %c0_i32_0 = arith.constant 0 : i32
    %2 = arith.cmpi ne, %1, %c0_i32_0 : i32
    scf.if %2 {
      %cst_136 = arith.constant 0.000000e+00 : f32
      %329 = vector.broadcast %cst_136 : f32 to vector<2x32xf32>
      %c0_137 = arith.constant 0 : index
      %c0_138 = arith.constant 0 : index
      %330 = vector.load %arg18[%c0_137, %c0_138] : memref<2x32xf32, #tpu.memory_space<vmem>>, vector<2x32xf32>
      tpu.vector_store %arg18[%c0_137, %c0_138], %329 {strides = array<i32>} : memref<2x32xf32, #tpu.memory_space<vmem>>, vector<2x32xf32>,
    } else {
    }
    %c0 = arith.constant 0 : index
    %c0_1 = arith.constant 0 : index
    %c0_2 = arith.constant 0 : index
    %3 = vector.load %arg2[%c0, %c0_1, %c0_2] : memref<4x2x32xf32, #tpu.memory_space<vmem>>, vector<4x2x32xf32>
    %4 = vector.shape_cast %3 : vector<4x2x32xf32> to vector<8x32xf32>
    %c0_3 = arith.constant 0 : index
    %c0_4 = arith.constant 0 : index
    %5 = vector.load %arg4[%c0_3, %c0_4] : memref<32x32xf32, #tpu.memory_space<vmem>>, vector<32x32xf32>
    %cst = arith.constant dense<0.000000e+00> : vector<8x32xf32>
    %6 = tpu.matmul %4, %5, %cst {dimension_numbers = #tpu.dot_dimension_numbers<[1], [0], [0], [1], [0, 0, 1, 1], [], []>} : vector<8x32xf32>, vector<32x32xf32>, vector<8x32xf32> -> vector<8x32xf32>
    %c0_5 = arith.constant 0 : index
    %c0_6 = arith.constant 0 : index
    %7 = vector.load %arg10[%c0_5, %c0_6] : memref<1x32xf32, #tpu.memory_space<vmem>>, vector<1x32xf32>
    %8 = vector.broadcast %7 : vector<1x32xf32> to vector<8x32xf32>
    %9 = arith.addf %6, %8 : vector<8x32xf32>
    %10 = vector.shape_cast %9 : vector<8x32xf32> to vector<4x2x32xf32>
    %c0_7 = arith.constant 0 : index
    %c0_8 = arith.constant 0 : index
    %c0_9 = arith.constant 0 : index
    %11 = vector.load %arg19[%c0_7, %c0_8, %c0_9] : memref<4x2x32xf32, #tpu.memory_space<vmem>>, vector<4x2x32xf32>
    tpu.vector_store %arg19[%c0_7, %c0_8, %c0_9], %10 {strides = array<i32>} : memref<4x2x32xf32, #tpu.memory_space<vmem>>, vector<4x2x32xf32>,
    %c0_10 = arith.constant 0 : index
    %c0_11 = arith.constant 0 : index
    %12 = vector.load %arg5[%c0_10, %c0_11] : memref<32x32xf32, #tpu.memory_space<vmem>>, vector<32x32xf32>
    %cst_12 = arith.constant dense<0.000000e+00> : vector<8x32xf32>
    %13 = tpu.matmul %4, %12, %cst_12 {dimension_numbers = #tpu.dot_dimension_numbers<[1], [0], [0], [1], [0, 0, 1, 1], [], []>} : vector<8x32xf32>, vector<32x32xf32>, vector<8x32xf32> -> vector<8x32xf32>
    %c0_13 = arith.constant 0 : index
    %c0_14 = arith.constant 0 : index
    %14 = vector.load %arg11[%c0_13, %c0_14] : memref<1x32xf32, #tpu.memory_space<vmem>>, vector<1x32xf32>
    %15 = vector.broadcast %14 : vector<1x32xf32> to vector<8x32xf32>
    %16 = arith.addf %13, %15 : vector<8x32xf32>
    %17 = vector.shape_cast %16 : vector<8x32xf32> to vector<4x2x32xf32>
    %c0_15 = arith.constant 0 : index
    %c0_16 = arith.constant 0 : index
    %c0_17 = arith.constant 0 : index
    %18 = vector.load %arg20[%c0_15, %c0_16, %c0_17] : memref<4x2x32xf32, #tpu.memory_space<vmem>>, vector<4x2x32xf32>
    tpu.vector_store %arg20[%c0_15, %c0_16, %c0_17], %17 {strides = array<i32>} : memref<4x2x32xf32, #tpu.memory_space<vmem>>, vector<4x2x32xf32>,
    %c0_18 = arith.constant 0 : index
    %c0_19 = arith.constant 0 : index
    %19 = vector.load %arg6[%c0_18, %c0_19] : memref<32x32xf32, #tpu.memory_space<vmem>>, vector<32x32xf32>
    %cst_20 = arith.constant dense<0.000000e+00> : vector<8x32xf32>
    %20 = tpu.matmul %4, %19, %cst_20 {dimension_numbers = #tpu.dot_dimension_numbers<[1], [0], [0], [1], [0, 0, 1, 1], [], []>} : vector<8x32xf32>, vector<32x32xf32>, vector<8x32xf32> -> vector<8x32xf32>
    %c0_21 = arith.constant 0 : index
    %c0_22 = arith.constant 0 : index
    %21 = vector.load %arg12[%c0_21, %c0_22] : memref<1x32xf32, #tpu.memory_space<vmem>>, vector<1x32xf32>
    %22 = vector.broadcast %21 : vector<1x32xf32> to vector<8x32xf32>
    %23 = arith.addf %20, %22 : vector<8x32xf32>
    %24 = vector.shape_cast %23 : vector<8x32xf32> to vector<4x2x32xf32>
    %c0_23 = arith.constant 0 : index
    %c0_24 = arith.constant 0 : index
    %c0_25 = arith.constant 0 : index
    %25 = vector.load %arg21[%c0_23, %c0_24, %c0_25] : memref<4x2x32xf32, #tpu.memory_space<vmem>>, vector<4x2x32xf32>
    tpu.vector_store %arg21[%c0_23, %c0_24, %c0_25], %24 {strides = array<i32>} : memref<4x2x32xf32, #tpu.memory_space<vmem>>, vector<4x2x32xf32>,
    %c0_26 = arith.constant 0 : index
    %c0_27 = arith.constant 0 : index
    %26 = vector.load %arg7[%c0_26, %c0_27] : memref<32x32xf32, #tpu.memory_space<vmem>>, vector<32x32xf32>
    %c0_28 = arith.constant 0 : index
    %c0_29 = arith.constant 0 : index
    %27 = vector.load %arg8[%c0_28, %c0_29] : memref<32x32xf32, #tpu.memory_space<vmem>>, vector<32x32xf32>
    %c0_30 = arith.constant 0 : index
    %c0_31 = arith.constant 0 : index
    %28 = vector.load %arg9[%c0_30, %c0_31] : memref<32x32xf32, #tpu.memory_space<vmem>>, vector<32x32xf32>
    %c0_32 = arith.constant 0 : index
    %c0_33 = arith.constant 0 : index
    %29 = vector.load %arg13[%c0_32, %c0_33] : memref<1x32xf32, #tpu.memory_space<vmem>>, vector<1x32xf32>
    %30 = vector.shape_cast %29 : vector<1x32xf32> to vector<1x32xf32>
    %31 = vector.broadcast %30 : vector<1x32xf32> to vector<2x32xf32>
    %c0_34 = arith.constant 0 : index
    %c0_35 = arith.constant 0 : index
    %32 = vector.load %arg14[%c0_34, %c0_35] : memref<1x32xf32, #tpu.memory_space<vmem>>, vector<1x32xf32>
    %33 = vector.shape_cast %32 : vector<1x32xf32> to vector<1x32xf32>
    %34 = vector.broadcast %33 : vector<1x32xf32> to vector<2x32xf32>
    %c0_36 = arith.constant 0 : index
    %c0_37 = arith.constant 0 : index
    %35 = vector.load %arg15[%c0_36, %c0_37] : memref<1x32xf32, #tpu.memory_space<vmem>>, vector<1x32xf32>
    %36 = vector.shape_cast %35 : vector<1x32xf32> to vector<1x32xf32>
    %37 = vector.broadcast %36 : vector<1x32xf32> to vector<2x32xf32>
    %c0_38 = arith.constant 0 : index
    %c0_39 = arith.constant 0 : index
    %38 = vector.load %arg3[%c0_38, %c0_39] : memref<2x1xi32, #tpu.memory_space<vmem>>, vector<2x1xi32>
    %c4_i32 = arith.constant 4 : i32
    %39 = arith.muli %arg1, %c4_i32 : i32
    %c0_40 = arith.constant 0 : index
    %c0_41 = arith.constant 0 : index
    %40 = vector.load %arg18[%c0_40, %c0_41] : memref<2x32xf32, #tpu.memory_space<vmem>>, vector<2x32xf32>
    %c0_i32_42 = arith.constant 0 : i32
    %cst_43 = arith.constant dense<0.000000e+00> : vector<2x32xf32>
    %41 = tpu.matmul %40, %26, %cst_43 {dimension_numbers = #tpu.dot_dimension_numbers<[1], [0], [0], [1], [0, 0, 1, 1], [], []>} : vector<2x32xf32>, vector<32x32xf32>, vector<2x32xf32> -> vector<2x32xf32>
    %cst_44 = arith.constant dense<0.000000e+00> : vector<2x32xf32>
    %42 = tpu.matmul %40, %27, %cst_44 {dimension_numbers = #tpu.dot_dimension_numbers<[1], [0], [0], [1], [0, 0, 1, 1], [], []>} : vector<2x32xf32>, vector<32x32xf32>, vector<2x32xf32> -> vector<2x32xf32>
    %cst_45 = arith.constant dense<0.000000e+00> : vector<2x32xf32>
    %43 = tpu.matmul %40, %28, %cst_45 {dimension_numbers = #tpu.dot_dimension_numbers<[1], [0], [0], [1], [0, 0, 1, 1], [], []>} : vector<2x32xf32>, vector<32x32xf32>, vector<2x32xf32> -> vector<2x32xf32>
    %44 = arith.addf %43, %31 : vector<2x32xf32>
    %45 = arith.index_cast %c0_i32_42 : i32 to index
    %c0_46 = arith.constant 0 : index
    %c0_47 = arith.constant 0 : index
    %46 = vector.load %arg19[%45, %c0_46, %c0_47] : memref<4x2x32xf32, #tpu.memory_space<vmem>>, vector<1x2x32xf32>
    %47 = vector.shape_cast %46 : vector<1x2x32xf32> to vector<2x32xf32>
    %48 = arith.addf %47, %41 : vector<2x32xf32>
    %49 = arith.negf %48 : vector<2x32xf32>
    %50 = math.exp %49 : vector<2x32xf32>
    %cst_48 = arith.constant 1.000000e+00 : f32
    %51 = vector.broadcast %cst_48 : f32 to vector<2x32xf32>
    %52 = arith.addf %51, %50 : vector<2x32xf32>
    %53 = arith.divf %51, %52 : vector<2x32xf32>
    %54 = arith.index_cast %c0_i32_42 : i32 to index
    %c0_49 = arith.constant 0 : index
    %c0_50 = arith.constant 0 : index
    %55 = vector.load %arg20[%54, %c0_49, %c0_50] : memref<4x2x32xf32, #tpu.memory_space<vmem>>, vector<1x2x32xf32>
    %56 = vector.shape_cast %55 : vector<1x2x32xf32> to vector<2x32xf32>
    %57 = arith.addf %56, %42 : vector<2x32xf32>
    %58 = arith.negf %57 : vector<2x32xf32>
    %59 = math.exp %58 : vector<2x32xf32>
    %cst_51 = arith.constant 1.000000e+00 : f32
    %60 = vector.broadcast %cst_51 : f32 to vector<2x32xf32>
    %61 = arith.addf %60, %59 : vector<2x32xf32>
    %62 = arith.divf %60, %61 : vector<2x32xf32>
    %63 = arith.index_cast %c0_i32_42 : i32 to index
    %c0_52 = arith.constant 0 : index
    %c0_53 = arith.constant 0 : index
    %64 = vector.load %arg21[%63, %c0_52, %c0_53] : memref<4x2x32xf32, #tpu.memory_space<vmem>>, vector<1x2x32xf32>
    %65 = vector.shape_cast %64 : vector<1x2x32xf32> to vector<2x32xf32>
    %66 = arith.mulf %53, %44 : vector<2x32xf32>
    %67 = arith.addf %65, %66 : vector<2x32xf32>
    %68 = math.tanh %67 : vector<2x32xf32>
    %cst_54 = arith.constant 1.000000e+00 : f32
    %69 = vector.broadcast %cst_54 : f32 to vector<2x32xf32>
    %70 = arith.subf %69, %62 : vector<2x32xf32>
    %71 = arith.mulf %70, %68 : vector<2x32xf32>
    %72 = arith.mulf %62, %40 : vector<2x32xf32>
    %73 = arith.addf %71, %72 : vector<2x32xf32>
    %74 = arith.addi %39, %c0_i32_42 : i32
    %75 = vector.broadcast %74 : i32 to vector<2x1xi32>
    %76 = arith.cmpi slt, %75, %38 : vector<2x1xi32>
    %77 = vector.shape_cast %76 : vector<2x1xi1> to vector<2x1xi1>
    %78 = vector.broadcast %77 : vector<2x1xi1> to vector<2x32xi1>
    %79 = arith.select %78, %73, %40 : vector<2x32xi1>, vector<2x32xf32>
    %cst_55 = arith.constant 0.000000e+00 : f32
    %80 = vector.shape_cast %76 : vector<2x1xi1> to vector<2x1xi1>
    %81 = vector.broadcast %80 : vector<2x1xi1> to vector<2x32xi1>
    %82 = vector.broadcast %cst_55 : f32 to vector<2x32xf32>
    %83 = arith.select %81, %73, %82 : vector<2x32xi1>, vector<2x32xf32>
    %cst_56 = arith.constant dense<0.000000e+00> : vector<2xf32>
    %84 = vector.multi_reduction <add>, %83, %cst_56 [1] : vector<2x32xf32> to vector<2xf32>
    %85 = vector.shape_cast %84 : vector<2xf32> to vector<2x1xf32>
    %cst_57 = arith.constant 3.200000e+01 : f32
    %86 = vector.broadcast %cst_57 : f32 to vector<2x1xf32>
    %87 = arith.divf %85, %86 : vector<2x1xf32>
    %88 = vector.broadcast %87 : vector<2x1xf32> to vector<2x32xf32>
    %89 = arith.subf %83, %88 : vector<2x32xf32>
    %90 = arith.mulf %89, %89 : vector<2x32xf32>
    %cst_58 = arith.constant dense<0.000000e+00> : vector<2xf32>
    %91 = vector.multi_reduction <add>, %90, %cst_58 [1] : vector<2x32xf32> to vector<2xf32>
    %92 = vector.shape_cast %91 : vector<2xf32> to vector<2x1xf32>
    %cst_59 = arith.constant 3.200000e+01 : f32
    %93 = vector.broadcast %cst_59 : f32 to vector<2x1xf32>
    %94 = arith.divf %92, %93 : vector<2x1xf32>
    %95 = vector.broadcast %87 : vector<2x1xf32> to vector<2x32xf32>
    %96 = arith.subf %83, %95 : vector<2x32xf32>
    %cst_60 = arith.constant 9.99999974E-6 : f32
    %97 = vector.broadcast %cst_60 : f32 to vector<2x1xf32>
    %98 = arith.addf %94, %97 : vector<2x1xf32>
    %99 = math.rsqrt %98 : vector<2x1xf32>
    %100 = vector.broadcast %99 : vector<2x1xf32> to vector<2x32xf32>
    %101 = arith.mulf %96, %100 : vector<2x32xf32>
    %102 = arith.mulf %101, %34 : vector<2x32xf32>
    %103 = arith.addf %102, %37 : vector<2x32xf32>
    %104 = arith.index_cast %c0_i32_42 : i32 to index
    %c0_61 = arith.constant 0 : index
    %c0_62 = arith.constant 0 : index
    %105 = vector.load %arg2[%104, %c0_61, %c0_62] : memref<4x2x32xf32, #tpu.memory_space<vmem>>, vector<1x2x32xf32>
    %106 = vector.shape_cast %105 : vector<1x2x32xf32> to vector<2x32xf32>
    %107 = arith.addf %106, %103 : vector<2x32xf32>
    %108 = arith.index_cast %c0_i32_42 : i32 to index
    %c0_63 = arith.constant 0 : index
    %c0_64 = arith.constant 0 : index
    %109 = vector.load %arg16[%108, %c0_63, %c0_64] : memref<4x2x32xf32, #tpu.memory_space<vmem>>, vector<1x2x32xf32>
    %110 = vector.shape_cast %109 : vector<1x2x32xf32> to vector<2x32xf32>
    %111 = vector.shape_cast %107 : vector<2x32xf32> to vector<1x2x32xf32>
    tpu.vector_store %arg16[%108, %c0_63, %c0_64], %111 {strides = array<i32>} : memref<4x2x32xf32, #tpu.memory_space<vmem>>, vector<1x2x32xf32>,
    %c1_i32 = arith.constant 1 : i32
    %cst_65 = arith.constant dense<0.000000e+00> : vector<2x32xf32>
    %112 = tpu.matmul %79, %26, %cst_65 {dimension_numbers = #tpu.dot_dimension_numbers<[1], [0], [0], [1], [0, 0, 1, 1], [], []>} : vector<2x32xf32>, vector<32x32xf32>, vector<2x32xf32> -> vector<2x32xf32>
    %cst_66 = arith.constant dense<0.000000e+00> : vector<2x32xf32>
    %113 = tpu.matmul %79, %27, %cst_66 {dimension_numbers = #tpu.dot_dimension_numbers<[1], [0], [0], [1], [0, 0, 1, 1], [], []>} : vector<2x32xf32>, vector<32x32xf32>, vector<2x32xf32> -> vector<2x32xf32>
    %cst_67 = arith.constant dense<0.000000e+00> : vector<2x32xf32>
    %114 = tpu.matmul %79, %28, %cst_67 {dimension_numbers = #tpu.dot_dimension_numbers<[1], [0], [0], [1], [0, 0, 1, 1], [], []>} : vector<2x32xf32>, vector<32x32xf32>, vector<2x32xf32> -> vector<2x32xf32>
    %115 = arith.addf %114, %31 : vector<2x32xf32>
    %116 = arith.index_cast %c1_i32 : i32 to index
    %c0_68 = arith.constant 0 : index
    %c0_69 = arith.constant 0 : index
    %117 = vector.load %arg19[%116, %c0_68, %c0_69] : memref<4x2x32xf32, #tpu.memory_space<vmem>>, vector<1x2x32xf32>
    %118 = vector.shape_cast %117 : vector<1x2x32xf32> to vector<2x32xf32>
    %119 = arith.addf %118, %112 : vector<2x32xf32>
    %120 = arith.negf %119 : vector<2x32xf32>
    %121 = math.exp %120 : vector<2x32xf32>
    %cst_70 = arith.constant 1.000000e+00 : f32
    %122 = vector.broadcast %cst_70 : f32 to vector<2x32xf32>
    %123 = arith.addf %122, %121 : vector<2x32xf32>
    %124 = arith.divf %122, %123 : vector<2x32xf32>
    %125 = arith.index_cast %c1_i32 : i32 to index
    %c0_71 = arith.constant 0 : index
    %c0_72 = arith.constant 0 : index
    %126 = vector.load %arg20[%125, %c0_71, %c0_72] : memref<4x2x32xf32, #tpu.memory_space<vmem>>, vector<1x2x32xf32>
    %127 = vector.shape_cast %126 : vector<1x2x32xf32> to vector<2x32xf32>
    %128 = arith.addf %127, %113 : vector<2x32xf32>
    %129 = arith.negf %128 : vector<2x32xf32>
    %130 = math.exp %129 : vector<2x32xf32>
    %cst_73 = arith.constant 1.000000e+00 : f32
    %131 = vector.broadcast %cst_73 : f32 to vector<2x32xf32>
    %132 = arith.addf %131, %130 : vector<2x32xf32>
    %133 = arith.divf %131, %132 : vector<2x32xf32>
    %134 = arith.index_cast %c1_i32 : i32 to index
    %c0_74 = arith.constant 0 : index
    %c0_75 = arith.constant 0 : index
    %135 = vector.load %arg21[%134, %c0_74, %c0_75] : memref<4x2x32xf32, #tpu.memory_space<vmem>>, vector<1x2x32xf32>
    %136 = vector.shape_cast %135 : vector<1x2x32xf32> to vector<2x32xf32>
    %137 = arith.mulf %124, %115 : vector<2x32xf32>
    %138 = arith.addf %136, %137 : vector<2x32xf32>
    %139 = math.tanh %138 : vector<2x32xf32>
    %cst_76 = arith.constant 1.000000e+00 : f32
    %140 = vector.broadcast %cst_76 : f32 to vector<2x32xf32>
    %141 = arith.subf %140, %133 : vector<2x32xf32>
    %142 = arith.mulf %141, %139 : vector<2x32xf32>
    %143 = arith.mulf %133, %79 : vector<2x32xf32>
    %144 = arith.addf %142, %143 : vector<2x32xf32>
    %145 = arith.addi %39, %c1_i32 : i32
    %146 = vector.broadcast %145 : i32 to vector<2x1xi32>
    %147 = arith.cmpi slt, %146, %38 : vector<2x1xi32>
    %148 = vector.shape_cast %147 : vector<2x1xi1> to vector<2x1xi1>
    %149 = vector.broadcast %148 : vector<2x1xi1> to vector<2x32xi1>
    %150 = arith.select %149, %144, %79 : vector<2x32xi1>, vector<2x32xf32>
    %cst_77 = arith.constant 0.000000e+00 : f32
    %151 = vector.shape_cast %147 : vector<2x1xi1> to vector<2x1xi1>
    %152 = vector.broadcast %151 : vector<2x1xi1> to vector<2x32xi1>
    %153 = vector.broadcast %cst_77 : f32 to vector<2x32xf32>
    %154 = arith.select %152, %144, %153 : vector<2x32xi1>, vector<2x32xf32>
    %cst_78 = arith.constant dense<0.000000e+00> : vector<2xf32>
    %155 = vector.multi_reduction <add>, %154, %cst_78 [1] : vector<2x32xf32> to vector<2xf32>
    %156 = vector.shape_cast %155 : vector<2xf32> to vector<2x1xf32>
    %cst_79 = arith.constant 3.200000e+01 : f32
    %157 = vector.broadcast %cst_79 : f32 to vector<2x1xf32>
    %158 = arith.divf %156, %157 : vector<2x1xf32>
    %159 = vector.broadcast %158 : vector<2x1xf32> to vector<2x32xf32>
    %160 = arith.subf %154, %159 : vector<2x32xf32>
    %161 = arith.mulf %160, %160 : vector<2x32xf32>
    %cst_80 = arith.constant dense<0.000000e+00> : vector<2xf32>
    %162 = vector.multi_reduction <add>, %161, %cst_80 [1] : vector<2x32xf32> to vector<2xf32>
    %163 = vector.shape_cast %162 : vector<2xf32> to vector<2x1xf32>
    %cst_81 = arith.constant 3.200000e+01 : f32
    %164 = vector.broadcast %cst_81 : f32 to vector<2x1xf32>
    %165 = arith.divf %163, %164 : vector<2x1xf32>
    %166 = vector.broadcast %158 : vector<2x1xf32> to vector<2x32xf32>
    %167 = arith.subf %154, %166 : vector<2x32xf32>
    %cst_82 = arith.constant 9.99999974E-6 : f32
    %168 = vector.broadcast %cst_82 : f32 to vector<2x1xf32>
    %169 = arith.addf %165, %168 : vector<2x1xf32>
    %170 = math.rsqrt %169 : vector<2x1xf32>
    %171 = vector.broadcast %170 : vector<2x1xf32> to vector<2x32xf32>
    %172 = arith.mulf %167, %171 : vector<2x32xf32>
    %173 = arith.mulf %172, %34 : vector<2x32xf32>
    %174 = arith.addf %173, %37 : vector<2x32xf32>
    %175 = arith.index_cast %c1_i32 : i32 to index
    %c0_83 = arith.constant 0 : index
    %c0_84 = arith.constant 0 : index
    %176 = vector.load %arg2[%175, %c0_83, %c0_84] : memref<4x2x32xf32, #tpu.memory_space<vmem>>, vector<1x2x32xf32>
    %177 = vector.shape_cast %176 : vector<1x2x32xf32> to vector<2x32xf32>
    %178 = arith.addf %177, %174 : vector<2x32xf32>
    %179 = arith.index_cast %c1_i32 : i32 to index
    %c0_85 = arith.constant 0 : index
    %c0_86 = arith.constant 0 : index
    %180 = vector.load %arg16[%179, %c0_85, %c0_86] : memref<4x2x32xf32, #tpu.memory_space<vmem>>, vector<1x2x32xf32>
    %181 = vector.shape_cast %180 : vector<1x2x32xf32> to vector<2x32xf32>
    %182 = vector.shape_cast %178 : vector<2x32xf32> to vector<1x2x32xf32>
    tpu.vector_store %arg16[%179, %c0_85, %c0_86], %182 {strides = array<i32>} : memref<4x2x32xf32, #tpu.memory_space<vmem>>, vector<1x2x32xf32>,
    %c2_i32 = arith.constant 2 : i32
    %cst_87 = arith.constant dense<0.000000e+00> : vector<2x32xf32>
    %183 = tpu.matmul %150, %26, %cst_87 {dimension_numbers = #tpu.dot_dimension_numbers<[1], [0], [0], [1], [0, 0, 1, 1], [], []>} : vector<2x32xf32>, vector<32x32xf32>, vector<2x32xf32> -> vector<2x32xf32>
    %cst_88 = arith.constant dense<0.000000e+00> : vector<2x32xf32>
    %184 = tpu.matmul %150, %27, %cst_88 {dimension_numbers = #tpu.dot_dimension_numbers<[1], [0], [0], [1], [0, 0, 1, 1], [], []>} : vector<2x32xf32>, vector<32x32xf32>, vector<2x32xf32> -> vector<2x32xf32>
    %cst_89 = arith.constant dense<0.000000e+00> : vector<2x32xf32>
    %185 = tpu.matmul %150, %28, %cst_89 {dimension_numbers = #tpu.dot_dimension_numbers<[1], [0], [0], [1], [0, 0, 1, 1], [], []>} : vector<2x32xf32>, vector<32x32xf32>, vector<2x32xf32> -> vector<2x32xf32>
    %186 = arith.addf %185, %31 : vector<2x32xf32>
    %187 = arith.index_cast %c2_i32 : i32 to index
    %c0_90 = arith.constant 0 : index
    %c0_91 = arith.constant 0 : index
    %188 = vector.load %arg19[%187, %c0_90, %c0_91] : memref<4x2x32xf32, #tpu.memory_space<vmem>>, vector<1x2x32xf32>
    %189 = vector.shape_cast %188 : vector<1x2x32xf32> to vector<2x32xf32>
    %190 = arith.addf %189, %183 : vector<2x32xf32>
    %191 = arith.negf %190 : vector<2x32xf32>
    %192 = math.exp %191 : vector<2x32xf32>
    %cst_92 = arith.constant 1.000000e+00 : f32
    %193 = vector.broadcast %cst_92 : f32 to vector<2x32xf32>
    %194 = arith.addf %193, %192 : vector<2x32xf32>
    %195 = arith.divf %193, %194 : vector<2x32xf32>
    %196 = arith.index_cast %c2_i32 : i32 to index
    %c0_93 = arith.constant 0 : index
    %c0_94 = arith.constant 0 : index
    %197 = vector.load %arg20[%196, %c0_93, %c0_94] : memref<4x2x32xf32, #tpu.memory_space<vmem>>, vector<1x2x32xf32>
    %198 = vector.shape_cast %197 : vector<1x2x32xf32> to vector<2x32xf32>
    %199 = arith.addf %198, %184 : vector<2x32xf32>
    %200 = arith.negf %199 : vector<2x32xf32>
    %201 = math.exp %200 : vector<2x32xf32>
    %cst_95 = arith.constant 1.000000e+00 : f32
    %202 = vector.broadcast %cst_95 : f32 to vector<2x32xf32>
    %203 = arith.addf %202, %201 : vector<2x32xf32>
    %204 = arith.divf %202, %203 : vector<2x32xf32>
    %205 = arith.index_cast %c2_i32 : i32 to index
    %c0_96 = arith.constant 0 : index
    %c0_97 = arith.constant 0 : index
    %206 = vector.load %arg21[%205, %c0_96, %c0_97] : memref<4x2x32xf32, #tpu.memory_space<vmem>>, vector<1x2x32xf32>
    %207 = vector.shape_cast %206 : vector<1x2x32xf32> to vector<2x32xf32>
    %208 = arith.mulf %195, %186 : vector<2x32xf32>
    %209 = arith.addf %207, %208 : vector<2x32xf32>
    %210 = math.tanh %209 : vector<2x32xf32>
    %cst_98 = arith.constant 1.000000e+00 : f32
    %211 = vector.broadcast %cst_98 : f32 to vector<2x32xf32>
    %212 = arith.subf %211, %204 : vector<2x32xf32>
    %213 = arith.mulf %212, %210 : vector<2x32xf32>
    %214 = arith.mulf %204, %150 : vector<2x32xf32>
    %215 = arith.addf %213, %214 : vector<2x32xf32>
    %216 = arith.addi %39, %c2_i32 : i32
    %217 = vector.broadcast %216 : i32 to vector<2x1xi32>
    %218 = arith.cmpi slt, %217, %38 : vector<2x1xi32>
    %219 = vector.shape_cast %218 : vector<2x1xi1> to vector<2x1xi1>
    %220 = vector.broadcast %219 : vector<2x1xi1> to vector<2x32xi1>
    %221 = arith.select %220, %215, %150 : vector<2x32xi1>, vector<2x32xf32>
    %cst_99 = arith.constant 0.000000e+00 : f32
    %222 = vector.shape_cast %218 : vector<2x1xi1> to vector<2x1xi1>
    %223 = vector.broadcast %222 : vector<2x1xi1> to vector<2x32xi1>
    %224 = vector.broadcast %cst_99 : f32 to vector<2x32xf32>
    %225 = arith.select %223, %215, %224 : vector<2x32xi1>, vector<2x32xf32>
    %cst_100 = arith.constant dense<0.000000e+00> : vector<2xf32>
    %226 = vector.multi_reduction <add>, %225, %cst_100 [1] : vector<2x32xf32> to vector<2xf32>
    %227 = vector.shape_cast %226 : vector<2xf32> to vector<2x1xf32>
    %cst_101 = arith.constant 3.200000e+01 : f32
    %228 = vector.broadcast %cst_101 : f32 to vector<2x1xf32>
    %229 = arith.divf %227, %228 : vector<2x1xf32>
    %230 = vector.broadcast %229 : vector<2x1xf32> to vector<2x32xf32>
    %231 = arith.subf %225, %230 : vector<2x32xf32>
    %232 = arith.mulf %231, %231 : vector<2x32xf32>
    %cst_102 = arith.constant dense<0.000000e+00> : vector<2xf32>
    %233 = vector.multi_reduction <add>, %232, %cst_102 [1] : vector<2x32xf32> to vector<2xf32>
    %234 = vector.shape_cast %233 : vector<2xf32> to vector<2x1xf32>
    %cst_103 = arith.constant 3.200000e+01 : f32
    %235 = vector.broadcast %cst_103 : f32 to vector<2x1xf32>
    %236 = arith.divf %234, %235 : vector<2x1xf32>
    %237 = vector.broadcast %229 : vector<2x1xf32> to vector<2x32xf32>
    %238 = arith.subf %225, %237 : vector<2x32xf32>
    %cst_104 = arith.constant 9.99999974E-6 : f32
    %239 = vector.broadcast %cst_104 : f32 to vector<2x1xf32>
    %240 = arith.addf %236, %239 : vector<2x1xf32>
    %241 = math.rsqrt %240 : vector<2x1xf32>
    %242 = vector.broadcast %241 : vector<2x1xf32> to vector<2x32xf32>
    %243 = arith.mulf %238, %242 : vector<2x32xf32>
    %244 = arith.mulf %243, %34 : vector<2x32xf32>
    %245 = arith.addf %244, %37 : vector<2x32xf32>
    %246 = arith.index_cast %c2_i32 : i32 to index
    %c0_105 = arith.constant 0 : index
    %c0_106 = arith.constant 0 : index
    %247 = vector.load %arg2[%246, %c0_105, %c0_106] : memref<4x2x32xf32, #tpu.memory_space<vmem>>, vector<1x2x32xf32>
    %248 = vector.shape_cast %247 : vector<1x2x32xf32> to vector<2x32xf32>
    %249 = arith.addf %248, %245 : vector<2x32xf32>
    %250 = arith.index_cast %c2_i32 : i32 to index
    %c0_107 = arith.constant 0 : index
    %c0_108 = arith.constant 0 : index
    %251 = vector.load %arg16[%250, %c0_107, %c0_108] : memref<4x2x32xf32, #tpu.memory_space<vmem>>, vector<1x2x32xf32>
    %252 = vector.shape_cast %251 : vector<1x2x32xf32> to vector<2x32xf32>
    %253 = vector.shape_cast %249 : vector<2x32xf32> to vector<1x2x32xf32>
    tpu.vector_store %arg16[%250, %c0_107, %c0_108], %253 {strides = array<i32>} : memref<4x2x32xf32, #tpu.memory_space<vmem>>, vector<1x2x32xf32>,
    %c3_i32 = arith.constant 3 : i32
    %cst_109 = arith.constant dense<0.000000e+00> : vector<2x32xf32>
    %254 = tpu.matmul %221, %26, %cst_109 {dimension_numbers = #tpu.dot_dimension_numbers<[1], [0], [0], [1], [0, 0, 1, 1], [], []>} : vector<2x32xf32>, vector<32x32xf32>, vector<2x32xf32> -> vector<2x32xf32>
    %cst_110 = arith.constant dense<0.000000e+00> : vector<2x32xf32>
    %255 = tpu.matmul %221, %27, %cst_110 {dimension_numbers = #tpu.dot_dimension_numbers<[1], [0], [0], [1], [0, 0, 1, 1], [], []>} : vector<2x32xf32>, vector<32x32xf32>, vector<2x32xf32> -> vector<2x32xf32>
    %cst_111 = arith.constant dense<0.000000e+00> : vector<2x32xf32>
    %256 = tpu.matmul %221, %28, %cst_111 {dimension_numbers = #tpu.dot_dimension_numbers<[1], [0], [0], [1], [0, 0, 1, 1], [], []>} : vector<2x32xf32>, vector<32x32xf32>, vector<2x32xf32> -> vector<2x32xf32>
    %257 = arith.addf %256, %31 : vector<2x32xf32>
    %258 = arith.index_cast %c3_i32 : i32 to index
    %c0_112 = arith.constant 0 : index
    %c0_113 = arith.constant 0 : index
    %259 = vector.load %arg19[%258, %c0_112, %c0_113] : memref<4x2x32xf32, #tpu.memory_space<vmem>>, vector<1x2x32xf32>
    %260 = vector.shape_cast %259 : vector<1x2x32xf32> to vector<2x32xf32>
    %261 = arith.addf %260, %254 : vector<2x32xf32>
    %262 = arith.negf %261 : vector<2x32xf32>
    %263 = math.exp %262 : vector<2x32xf32>
    %cst_114 = arith.constant 1.000000e+00 : f32
    %264 = vector.broadcast %cst_114 : f32 to vector<2x32xf32>
    %265 = arith.addf %264, %263 : vector<2x32xf32>
    %266 = arith.divf %264, %265 : vector<2x32xf32>
    %267 = arith.index_cast %c3_i32 : i32 to index
    %c0_115 = arith.constant 0 : index
    %c0_116 = arith.constant 0 : index
    %268 = vector.load %arg20[%267, %c0_115, %c0_116] : memref<4x2x32xf32, #tpu.memory_space<vmem>>, vector<1x2x32xf32>
    %269 = vector.shape_cast %268 : vector<1x2x32xf32> to vector<2x32xf32>
    %270 = arith.addf %269, %255 : vector<2x32xf32>
    %271 = arith.negf %270 : vector<2x32xf32>
    %272 = math.exp %271 : vector<2x32xf32>
    %cst_117 = arith.constant 1.000000e+00 : f32
    %273 = vector.broadcast %cst_117 : f32 to vector<2x32xf32>
    %274 = arith.addf %273, %272 : vector<2x32xf32>
    %275 = arith.divf %273, %274 : vector<2x32xf32>
    %276 = arith.index_cast %c3_i32 : i32 to index
    %c0_118 = arith.constant 0 : index
    %c0_119 = arith.constant 0 : index
    %277 = vector.load %arg21[%276, %c0_118, %c0_119] : memref<4x2x32xf32, #tpu.memory_space<vmem>>, vector<1x2x32xf32>
    %278 = vector.shape_cast %277 : vector<1x2x32xf32> to vector<2x32xf32>
    %279 = arith.mulf %266, %257 : vector<2x32xf32>
    %280 = arith.addf %278, %279 : vector<2x32xf32>
    %281 = math.tanh %280 : vector<2x32xf32>
    %cst_120 = arith.constant 1.000000e+00 : f32
    %282 = vector.broadcast %cst_120 : f32 to vector<2x32xf32>
    %283 = arith.subf %282, %275 : vector<2x32xf32>
    %284 = arith.mulf %283, %281 : vector<2x32xf32>
    %285 = arith.mulf %275, %221 : vector<2x32xf32>
    %286 = arith.addf %284, %285 : vector<2x32xf32>
    %287 = arith.addi %39, %c3_i32 : i32
    %288 = vector.broadcast %287 : i32 to vector<2x1xi32>
    %289 = arith.cmpi slt, %288, %38 : vector<2x1xi32>
    %290 = vector.shape_cast %289 : vector<2x1xi1> to vector<2x1xi1>
    %291 = vector.broadcast %290 : vector<2x1xi1> to vector<2x32xi1>
    %292 = arith.select %291, %286, %221 : vector<2x32xi1>, vector<2x32xf32>
    %cst_121 = arith.constant 0.000000e+00 : f32
    %293 = vector.shape_cast %289 : vector<2x1xi1> to vector<2x1xi1>
    %294 = vector.broadcast %293 : vector<2x1xi1> to vector<2x32xi1>
    %295 = vector.broadcast %cst_121 : f32 to vector<2x32xf32>
    %296 = arith.select %294, %286, %295 : vector<2x32xi1>, vector<2x32xf32>
    %cst_122 = arith.constant dense<0.000000e+00> : vector<2xf32>
    %297 = vector.multi_reduction <add>, %296, %cst_122 [1] : vector<2x32xf32> to vector<2xf32>
    %298 = vector.shape_cast %297 : vector<2xf32> to vector<2x1xf32>
    %cst_123 = arith.constant 3.200000e+01 : f32
    %299 = vector.broadcast %cst_123 : f32 to vector<2x1xf32>
    %300 = arith.divf %298, %299 : vector<2x1xf32>
    %301 = vector.broadcast %300 : vector<2x1xf32> to vector<2x32xf32>
    %302 = arith.subf %296, %301 : vector<2x32xf32>
    %303 = arith.mulf %302, %302 : vector<2x32xf32>
    %cst_124 = arith.constant dense<0.000000e+00> : vector<2xf32>
    %304 = vector.multi_reduction <add>, %303, %cst_124 [1] : vector<2x32xf32> to vector<2xf32>
    %305 = vector.shape_cast %304 : vector<2xf32> to vector<2x1xf32>
    %cst_125 = arith.constant 3.200000e+01 : f32
    %306 = vector.broadcast %cst_125 : f32 to vector<2x1xf32>
    %307 = arith.divf %305, %306 : vector<2x1xf32>
    %308 = vector.broadcast %300 : vector<2x1xf32> to vector<2x32xf32>
    %309 = arith.subf %296, %308 : vector<2x32xf32>
    %cst_126 = arith.constant 9.99999974E-6 : f32
    %310 = vector.broadcast %cst_126 : f32 to vector<2x1xf32>
    %311 = arith.addf %307, %310 : vector<2x1xf32>
    %312 = math.rsqrt %311 : vector<2x1xf32>
    %313 = vector.broadcast %312 : vector<2x1xf32> to vector<2x32xf32>
    %314 = arith.mulf %309, %313 : vector<2x32xf32>
    %315 = arith.mulf %314, %34 : vector<2x32xf32>
    %316 = arith.addf %315, %37 : vector<2x32xf32>
    %317 = arith.index_cast %c3_i32 : i32 to index
    %c0_127 = arith.constant 0 : index
    %c0_128 = arith.constant 0 : index
    %318 = vector.load %arg2[%317, %c0_127, %c0_128] : memref<4x2x32xf32, #tpu.memory_space<vmem>>, vector<1x2x32xf32>
    %319 = vector.shape_cast %318 : vector<1x2x32xf32> to vector<2x32xf32>
    %320 = arith.addf %319, %316 : vector<2x32xf32>
    %321 = arith.index_cast %c3_i32 : i32 to index
    %c0_129 = arith.constant 0 : index
    %c0_130 = arith.constant 0 : index
    %322 = vector.load %arg16[%321, %c0_129, %c0_130] : memref<4x2x32xf32, #tpu.memory_space<vmem>>, vector<1x2x32xf32>
    %323 = vector.shape_cast %322 : vector<1x2x32xf32> to vector<2x32xf32>
    %324 = vector.shape_cast %320 : vector<2x32xf32> to vector<1x2x32xf32>
    tpu.vector_store %arg16[%321, %c0_129, %c0_130], %324 {strides = array<i32>} : memref<4x2x32xf32, #tpu.memory_space<vmem>>, vector<1x2x32xf32>,
    %c4_i32_131 = arith.constant 4 : i32
    %c0_132 = arith.constant 0 : index
    %c0_133 = arith.constant 0 : index
    %325 = vector.load %arg18[%c0_132, %c0_133] : memref<2x32xf32, #tpu.memory_space<vmem>>, vector<2x32xf32>
    tpu.vector_store %arg18[%c0_132, %c0_133], %292 {strides = array<i32>} : memref<2x32xf32, #tpu.memory_space<vmem>>, vector<2x32xf32>,
    %c1_i32_134 = arith.constant 1 : i32
    %326 = arith.cmpi eq, %arg1, %c1_i32_134 : i32
    %327 = arith.extui %326 : i1 to i32
    %c0_i32_135 = arith.constant 0 : i32
    %328 = arith.cmpi ne, %327, %c0_i32_135 : i32
    scf.if %328 {
      %c0_136 = arith.constant 0 : index
      %c0_137 = arith.constant 0 : index
      %c0_138 = arith.constant 0 : index
      %329 = vector.load %arg17[%c0_136, %c0_137, %c0_138] : memref<1x2x32xf32, #tpu.memory_space<vmem>>, vector<1x2x32xf32>
      %330 = vector.shape_cast %329 : vector<1x2x32xf32> to vector<2x32xf32>
      %331 = vector.shape_cast %292 : vector<2x32xf32> to vector<1x2x32xf32>
      tpu.vector_store %arg17[%c0_136, %c0_137, %c0_138], %331 {strides = array<i32>} : memref<1x2x32xf32, #tpu.memory_space<vmem>>, vector<1x2x32xf32>,
    } else {
    }
    return
  }
  func.func @transform_0(%arg0: i32, %arg1: i32) -> (i32, i32, i32) {
    %c0_i32 = arith.constant 0 : i32
    %c0_i32_0 = arith.constant 0 : i32
    return %arg1, %arg0, %c0_i32 : i32, i32, i32
  }
  func.func @transform_1(%arg0: i32, %arg1: i32) -> (i32, i32) {
    %c0_i32 = arith.constant 0 : i32
    %c0_i32_0 = arith.constant 0 : i32
    return %arg0, %c0_i32 : i32, i32
  }
  func.func @transform_2(%arg0: i32, %arg1: i32) -> (i32, i32) {
    %c0_i32 = arith.constant 0 : i32
    %c0_i32_0 = arith.constant 0 : i32
    %c0_i32_1 = arith.constant 0 : i32
    return %c0_i32, %c0_i32_0 : i32, i32
  }
  func.func @transform_3(%arg0: i32, %arg1: i32) -> (i32, i32) {
    %c0_i32 = arith.constant 0 : i32
    %c0_i32_0 = arith.constant 0 : i32
    %c0_i32_1 = arith.constant 0 : i32
    return %c0_i32, %c0_i32_0 : i32, i32
  }
  func.func @transform_4(%arg0: i32, %arg1: i32) -> (i32, i32) {
    %c0_i32 = arith.constant 0 : i32
    %c0_i32_0 = arith.constant 0 : i32
    %c0_i32_1 = arith.constant 0 : i32
    return %c0_i32, %c0_i32_0 : i32, i32
  }
  func.func @transform_5(%arg0: i32, %arg1: i32) -> (i32, i32) {
    %c0_i32 = arith.constant 0 : i32
    %c0_i32_0 = arith.constant 0 : i32
    %c0_i32_1 = arith.constant 0 : i32
    return %c0_i32, %c0_i32_0 : i32, i32
  }
  func.func @transform_6(%arg0: i32, %arg1: i32) -> (i32, i32) {
    %c0_i32 = arith.constant 0 : i32
    %c0_i32_0 = arith.constant 0 : i32
    %c0_i32_1 = arith.constant 0 : i32
    return %c0_i32, %c0_i32_0 : i32, i32
  }
  func.func @transform_7(%arg0: i32, %arg1: i32) -> (i32, i32) {
    %c0_i32 = arith.constant 0 : i32
    %c0_i32_0 = arith.constant 0 : i32
    %c0_i32_1 = arith.constant 0 : i32
    return %c0_i32, %c0_i32_0 : i32, i32
  }
  func.func @transform_8(%arg0: i32, %arg1: i32) -> (i32, i32) {
    %c0_i32 = arith.constant 0 : i32
    %c0_i32_0 = arith.constant 0 : i32
    %c0_i32_1 = arith.constant 0 : i32
    return %c0_i32, %c0_i32_0 : i32, i32
  }
  func.func @transform_9(%arg0: i32, %arg1: i32) -> (i32, i32) {
    %c0_i32 = arith.constant 0 : i32
    %c0_i32_0 = arith.constant 0 : i32
    %c0_i32_1 = arith.constant 0 : i32
    return %c0_i32, %c0_i32_0 : i32, i32
  }
  func.func @transform_10(%arg0: i32, %arg1: i32) -> (i32, i32) {
    %c0_i32 = arith.constant 0 : i32
    %c0_i32_0 = arith.constant 0 : i32
    %c0_i32_1 = arith.constant 0 : i32
    return %c0_i32, %c0_i32_0 : i32, i32
  }
  func.func @transform_11(%arg0: i32, %arg1: i32) -> (i32, i32) {
    %c0_i32 = arith.constant 0 : i32
    %c0_i32_0 = arith.constant 0 : i32
    %c0_i32_1 = arith.constant 0 : i32
    return %c0_i32, %c0_i32_0 : i32, i32
  }
  func.func @transform_12(%arg0: i32, %arg1: i32) -> (i32, i32) {
    %c0_i32 = arith.constant 0 : i32
    %c0_i32_0 = arith.constant 0 : i32
    %c0_i32_1 = arith.constant 0 : i32
    return %c0_i32, %c0_i32_0 : i32, i32
  }
  func.func @transform_13(%arg0: i32, %arg1: i32) -> (i32, i32) {
    %c0_i32 = arith.constant 0 : i32
    %c0_i32_0 = arith.constant 0 : i32
    %c0_i32_1 = arith.constant 0 : i32
    return %c0_i32, %c0_i32_0 : i32, i32
  }
  func.func @transform_14(%arg0: i32, %arg1: i32) -> (i32, i32, i32) {
    %c0_i32 = arith.constant 0 : i32
    %c0_i32_0 = arith.constant 0 : i32
    return %arg1, %arg0, %c0_i32 : i32, i32, i32
  }
  func.func @transform_15(%arg0: i32, %arg1: i32) -> (i32, i32, i32) {
    %c0_i32 = arith.constant 0 : i32
    %c0_i32_0 = arith.constant 0 : i32
    %c0_i32_1 = arith.constant 0 : i32
    return %c0_i32, %arg0, %c0_i32_0 : i32, i32, i32
  }
}

</mosaic_0001>

<bundles_post_ra>
// kernel: tpu_custom_call.1
= control target key start
LH: loop header
LB: loop body
LE: loop exit
PB: predicated region body
PF: predicated region fallthrough
CT: control target
= control target key end

     0   :  { %s2849_s0 = inlined_call_operand.hbm [shape: f32[8,2,32], index: 0, kind: input, shape index: {}]   ;;  %s2850_s1 = inlined_call_operand.vmem [shape: s32[2,1], index: 1, kind: input, shape index: {}]   ;;  %s2851_s2 = inlined_call_operand.hbm [shape: f32[32,32], index: 2, kind: input, shape index: {}]   ;;  %s2852_s3 = inlined_call_operand.hbm [shape: f32[32,32], index: 3, kind: input, shape index: {}]   ;;  %s2853_s4 = inlined_call_operand.hbm [shape: f32[32,32], index: 4, kind: input, shape index: {}]   ;;  %s2854_s5 = inlined_call_operand.hbm [shape: f32[32,32], index: 5, kind: input, shape index: {}]   ;;  %s2855_s6 = inlined_call_operand.hbm [shape: f32[32,32], index: 6, kind: input, shape index: {}]   ;;  %s2856_s7 = inlined_call_operand.hbm [shape: f32[32,32], index: 7, kind: input, shape index: {}]   ;;  %s2857_s8 = inlined_call_operand.vmem [shape: f32[1,32], index: 8, kind: input, shape index: {}]   ;;  %s2858_s9 = inlined_call_operand.vmem [shape: f32[1,32], index: 9, kind: input, shape index: {}]   ;;  %s2859_s10 = inlined_call_operand.vmem [shape: f32[1,32], index: 10, kind: input, shape index: {}]   ;;  %s2860_s11 = inlined_call_operand.vmem [shape: f32[1,32], index: 11, kind: input, shape index: {}]   ;;  %s2861_s12 = inlined_call_operand.vmem [shape: f32[1,32], index: 12, kind: input, shape index: {}]   ;;  %s2862_s13 = inlined_call_operand.vmem [shape: f32[1,32], index: 13, kind: input, shape index: {}]   ;;  %s2863_s14 = inlined_call_operand.hbm [shape: f32[8,2,32], index: 14, kind: output, shape index: {0}]   ;;  %s2864_s15 = inlined_call_operand.hbm [shape: f32[1,2,32], index: 15, kind: output, shape index: {1}]  }
   0x1   :  { %2868 = sst [smem:[#allocation28_spill]] %s2851_s2 }
   0x2   :  { %2869 = sst [smem:[#allocation29_spill]] %s2852_s3 }
   0x3   :  { %2870 = sst [smem:[#allocation30_spill]] %s2853_s4 }
   0x4   :  { %2871 = sst [smem:[#allocation31_spill]] %s2854_s5 }
   0x5   :  { %2872 = sst [smem:[#allocation32_spill]] %s2855_s6 }
   0x6   :  { %2873 = sst [smem:[#allocation33_spill]] %s2856_s7 }
   0x7   :  { %2874 = sst [smem:[#allocation34_spill]] %s2859_s10 }
   0x8   :  { %2875 = sst [smem:[#allocation35_spill]] %s2860_s11 }
   0x9   :  { %2876 = sst [smem:[#allocation36_spill]] %s2861_s12 }
   0xa   :  { %2877 = sst [smem:[#allocation37_spill]] %s2862_s13 }
   0xb   :  { %2878 = sst [smem:[#allocation38_spill]] %s2863_s14 }
   0xc   :  { %2879 = sst [smem:[#allocation39_spill]] %s2864_s15 }
   0xd   :  { %21 = vsyncpa [#allocation7], 0 }
   0xe   :  { %23 = vsyncpa [#allocation7 + $0x1], 0 }
   0xf   :  { %24 = vsyncpa [#allocation10], 0 }
  0x10   :  { %25 = vsyncpa [#allocation13], 0 }
  0x11   :  { %26 = vsyncpa [#allocation16], 0 }
  0x12   :  { %27 = vsyncpa [#allocation8], 0 }
  0x13   :  { %29 = vsyncpa [#allocation8 + $0x1], 0 }
  0x14   :  { %30 = vsyncpa [#allocation20], 0  ;;  %s2368_s18 = smov 0   ;;  %s2370_s19 = smov 0  }
  0x15   :  { %s2372_s20 = smov 0   ;;  %s2374_s21 = smov 0  }
  0x16   :  { %s2376_s22 = smov 0   ;;  %s2378_s23 = smov 0  }
  0x17 LB: > { %s2865_s24 = sadd.s32 4294967295, %s2270_s23   ;;  %p1675_p0 = scmp.ge.s32.totalorder %s2270_s23, 1  ;;  %s2270_s23 = sphi %s2378_s23, %s36_s23   ;;  %s2266_s22 = sphi %s2376_s22, %s2907_s22   ;;  %s2262_s21 = sphi %s2374_s21, %s2906_s21   ;;  %s2258_s20 = sphi %s2372_s20, %s2905_s20   ;;  %s2254_s19 = sphi %s2370_s19, %s2904_s19   ;;  %s2250_s18 = sphi %s2368_s18, %s2903_s18  }
  0x18   : > { %p2402_p1 = scmp.eq.s32.totalorder %s2865_s24, 0  ;;  %p413_p2 = scmp.lt.s32.totalorder %s2270_s23, 3 }
  0x19   : > { %s2881_s2 = sld [smem:[#allocation28_spill]]  ;;  %s2272_s30 = smov [#allocation9]  }
  0x1a   : > { %p2410_p3 = pnand %p1675_p0, %p413_p2  ;;  %s433_s16 = sshll.u32 %s2272_s30, 4  ;;  %s434_s16 = int_to_ptr.vmem [resolvable:$true] %s433_s16 }
  0x1b   : > { %p1683_p6 = scmp.ge.s32.totalorder %s2270_s23, 2  ;;  %s2884_s4 = sld [smem:[#allocation30_spill]] }
  0x1c   : > { %p1769_p4 = pneg %p2410_p3  ;;  %s2274_s15 = smov 8  }
  0x1d   : > { %s2275_s30 = smov [#allocation12]   ;;  %s2885_s6 = sld [smem:[#allocation32_spill]] }
  0x1e   : > { %p2418_p5 = pnand %p1769_p4, %p2402_p1  ;;  %s461_s14 = sshll.u32 %s2275_s30, 4  ;;  %s462_s14 = int_to_ptr.vmem [resolvable:$true] %s461_s14 }
  0x1f   : > { %s431_s28 = sshll.u32 %s2881_s2, 4  ;;  %s2273_s2 = smov 128   ;;  %s432_s28 = int_to_ptr.hbm [resolvable:$true] %s431_s28 }
  0x20   : > { %1772 = dma.hbm_to_vmem [thread:$0]  (!%p2418_p5), %s432_s28, 512, %s434_s16, [#allocation10], %s2273_s2, %s2273_s2, %s2274_s15  }
  0x21   : > { %s459_s24 = sshll.u32 %s2884_s4, 4  ;;  %s2886_s3 = sld [smem:[#allocation29_spill]]  ;;  %s460_s24 = int_to_ptr.hbm [resolvable:$true] %s459_s24 }
  0x22   : > { %1778 = dma.hbm_to_vmem [thread:$0]  (!%p2418_p5), %s460_s24, 512, %s462_s14, [#allocation13], %s2273_s2, %s2273_s2, %s2274_s15  }
  0x23   : > { %s487_s11 = sshll.u32 %s2885_s6, 4  ;;  %s2276_s10 = smov [#allocation15]   ;;  %s488_s11 = int_to_ptr.hbm [resolvable:$true] %s487_s11 }
  0x24   : > { %s489_s28 = sshll.u32 %s2276_s10, 4  ;;  %s2277_s12 = smov [#allocation11]   ;;  %s490_s28 = int_to_ptr.vmem [resolvable:$true] %s489_s28 }
  0x25   : > { %1784 = dma.hbm_to_vmem [thread:$0]  (!%p2418_p5), %s488_s11, 512, %s490_s28, [#allocation16], %s2273_s2, %s2273_s2, %s2274_s15  }
  0x26   : > { %s447_s13 = sshll.u32 %s2277_s12, 4  ;;  %s2887_s5 = sld [smem:[#allocation31_spill]]  ;;  %s448_s13 = int_to_ptr.vmem [resolvable:$true] %s447_s13 }
  0x27   : > { %s445_s4 = sshll.u32 %s2886_s3, 4  ;;  %s2888_s7 = sld [smem:[#allocation33_spill]]  ;;  %s446_s4 = int_to_ptr.hbm [resolvable:$true] %s445_s4 }
  0x28   : > { %1775 = dma.hbm_to_vmem [thread:$0]  (!%p2418_p5), %s446_s4, 512, %s448_s13, [#allocation10], %s2273_s2, %s2273_s2, %s2274_s15  }
  0x29   : > { %s2278_s26 = smov [#allocation14]   ;;  %s2279_s28 = smov [#allocation17]  }
  0x2a   : > { %s475_s27 = sshll.u32 %s2278_s26, 4  ;;  %s503_s4 = sshll.u32 %s2279_s28, 4  ;;  %s476_s27 = int_to_ptr.vmem [resolvable:$true] %s475_s27  ;;  %s504_s4 = int_to_ptr.vmem [resolvable:$true] %s503_s4 }
  0x2b   : > { %s1674_s12 = sadd.s32 4294967294, %s2270_s23   ;;  %s45_s13 = sadd.s32 1, %s2266_s22 }
  0x2c   : > { %s473_s24 = sshll.u32 %s2887_s5, 4  ;;  %p46_p7 = scmp.ge.s32.totalorder %s45_s13, 2  ;;  %s474_s24 = int_to_ptr.hbm [resolvable:$true] %s473_s24 }
  0x2d   : > { %s501_s30 = sshll.u32 %s2888_s7, 4  ;;  %s57_s16 = sadd.s32 1, %s2258_s20  ;;  %s502_s30 = int_to_ptr.hbm [resolvable:$true] %s501_s30 }
  0x2e   : > { %1781 = dma.hbm_to_vmem [thread:$0]  (!%p2418_p5), %s474_s24, 512, %s476_s27, [#allocation13], %s2273_s2, %s2273_s2, %s2274_s15  }
  0x2f   : > { %1787 = dma.hbm_to_vmem [thread:$0]  (!%p2418_p5), %s502_s30, 512, %s504_s4, [#allocation16], %s2273_s2, %s2273_s2, %s2274_s15  }
  0x30   : > { %p64_p8 = scmp.ne.s32.totalorder %s2258_s20, %s2254_s19  ;;  %p65_p9 = scmp.eq.s32.totalorder %s2270_s23, 0 }
  0x31   : > { %s2909_s13 = smov (%p46_p7, %s45_s13), 0  ;;  %p70_p11 = scmp.ne.s32.totalorder %s2254_s19, %s2250_s18 }
  0x32   : > { %2889 = sst [smem:[#allocation27_spill]] %s2909_s13  ;;  %p2476_p10 = por %p65_p9, %p64_p8 }
  0x33   : > { %s52_s17 = ssub.s32 %s2266_s22, %s2909_s13  ;;  %s2891_s2 = sadd.s32 4294967295, %s2270_s23  }
  0x34   : > { %p2486_p12 = scmp.eq.s32.totalorder %s2891_s2, 1  ;;  %p55_p13 = scmp.eq.s32.totalorder %s52_s17, 0 }
  0x35   : > { %p2492_p0 = por %p2402_p1, %p70_p11  ;;  %p380_p4 = scmp.eq.s32.totalorder %s1674_s12, 1 }
  0x36   : > { %p2498_p2 = por %p2486_p12, %p64_p8  ;;  %p1802_p7 = scmp.lt.s32.totalorder %s2270_s23, 2 }
  0x37   : > { %s2503_s11 = scalar_select %p55_p13, %s2258_s20, %s57_s16  }
  0x38   : > { %p2505_p5 = por %p380_p4, %p70_p11  ;;  %s535_s26 = sand.u32 1, %s2258_s20  }
  0x39   : > { %s1735_s27 = sshll.u32 %s2266_s22, 3  ;;  %s1684_s28 = sshll.u32 %s535_s26, 3 }
  0x3a   : > { %s545_s2 = scalar_lea.hbm %s2849_s0, %s1735_s27  ;;  %s539_s5 = scalar_lea.vmem [#allocation6], %s1684_s28 }
  0x3b   : > { %s546_s3 = sshll.u32 %s545_s2, 4  ;;  %s548_s6 = sshll.u32 %s539_s5, 4  ;;  %s547_s3 = int_to_ptr.hbm [resolvable:$true] %s546_s3  ;;  %s549_s6 = int_to_ptr.vmem [resolvable:$true] %s548_s6 }
  0x3c   : > { %p1789_p8 = pnand %p1802_p7, %p2476_p10  ;;  %s536_s12 = scalar_lea.sflag [#allocation7], %s535_s26 }
  0x3d   : > { %s2280_s16 = smov 32   ;;  %s2281_s7 = smov 2  }
  0x3e   : > { %1791 = dma.hbm_to_vmem [thread:$0]  (!%p1789_p8), %s547_s3, 128, %s549_s6, %s536_s12, %s2280_s16, %s2280_s16, %s2281_s7  }
  0x3f   : > { %560 = sbr.rel (%p2410_p3) target bundleno = 1108 (0x454), region = 76  ;;  %s2520_s13 = sand.u32 (!%p2410_p3), 1, %s2254_s19  }
  0x40   : > { %s1688_s27 = sshll.u32 (!%p2410_p3), %s2520_s13, 3  ;;  %s563_s28 = scalar_lea.sflag (!%p2410_p3), [#allocation7], %s2520_s13 }
  0x41   : > { %s2524_s5 = scalar_lea.vmem (!%p2410_p3), [#allocation6], %s1688_s27 }
  0x44   : > { %2225 = dma.done.wait (%p2492_p0), %s563_s28, 128  }
  0x45   : > { %2227 = vsyncadd (%p2492_p0), %s563_s28, 4294967168 }
  0x46   : > { %2229 = dma.done.wait (%p2402_p1), [#allocation10], 1024  }
  0x47   : > { %2231 = vsyncadd (%p2402_p1), [#allocation10], 4294966272 }
  0x48   : > { %2233 = dma.done.wait (%p2402_p1), [#allocation13], 1024  }
  0x49   : > { %2235 = vsyncadd (%p2402_p1), [#allocation13], 4294966272 }
  0x4a   : > { %2237 = dma.done.wait (%p2402_p1), [#allocation16], 1024  }
  0x4b   : > { %2239 = vsyncadd (%p2402_p1), [#allocation16], 4294966272  ;;  %s2542_s3 = scalar_lea.vmem [#allocation18], %s1688_s27  ;;  %p1696_p3 = scmp.ne.s32.totalorder %s2262_s21, 0 }
  0x4d   : > { %657 = sbr.rel (%p1696_p3) target bundleno = 84 (0x54), region = 108 }
  0x52   : > { %vm658_vm0 = vcmask 254976   ;;  %v2282_v0 = vmov 0.0  }
  0x53   : > { %659 = vst.msk [vmem:[#allocation2] sm:$0x3] %vm658_vm0, %v2282_v0 }
  0x54 PF: > { %v667_v1 = vld [vmem:[#allocation9 + $0x18] sm:$0xff]  ;;  %v666_v2 = vld [vmem:[#allocation9 + $0x10] sm:$0xff]  ;;  %v665_v3 = vld [vmem:[#allocation9 + $0x8] sm:$0xff]  ;;  %s2568_s6 = sshll.u32 %s2262_s21, 2  ;;  %v2283_v20 = vmov 0   ;;  %vm684_vm1 = vcmask 261120  }
  0x55   : > { %699 = vmatpush.msra.mxu0 %v667_v1  ;;  %v2545_v4 = vld [vmem:[#allocation14 + $0x18] sm:$0xff]  ;;  %v2547_v5 = vld [vmem:[#allocation14 + $0x10] sm:$0xff]  ;;  %v2563_v11 = vld [vmem:[#allocation14 + $0x8] sm:$0xff]  ;;  %1876 = vset.pattern.permute.xlu0 %v2283_v20  ;;  %v957_v21 = vstv %s2568_s6  ;;  %s1116_s7 = sadd.s32 1, %s2568_s6  ;;  %vm714_vm4 = vcmask 254976   ;;  %s2896_s12 = sld [smem:[#allocation34_spill]] }
  0x56   : > { %859 = vmatpush.msra.mxu3 %v2545_v4  ;;  %v2551_v6 = vld [vmem:[%s2524_s5] sm:$0x3]  ;;  %v2554_v7 = vld [vmem:[%s2524_s5 + $0x2] sm:$0x3]  ;;  %v2557_v8 = vld [vmem:[%s2524_s5 + $0x4] sm:$0x3]  ;;  %v1117_v31 = vstv %s1116_s7  ;;  %1877 = vset.pattern.permute.xlu1 %v2283_v20 }
  0x57   : > { %700 = vmatpush.msra.mxu0 %v666_v2  ;;  %v2560_v9 = vld [vmem:[%s2524_s5 + $0x6] sm:$0x3]  ;;  %676 = vst [vmem:[#allocation1] ss:$4 sm:$0xff] %v2551_v6  ;;  %v664_v12 = vld [vmem:[#allocation9] sm:$0xff]  ;;  %v720_v15 = vld [vmem:[#allocation11 + $0x8] sm:$0xff] }
  0x58   : > { %v722_v10 = vld [vmem:[#allocation11 + $0x18] sm:$0xff]  ;;  %860 = vmatpush.msra.mxu3 %v2547_v5  ;;  %678 = vst [vmem:[#allocation1 + $0x1] ss:$4 sm:$0xff] %v2554_v7  ;;  %v721_v13 = vld [vmem:[#allocation11 + $0x10] sm:$0xff]  ;;  %v2571_v14 = vld [vmem:[#allocation14] sm:$0xff]  ;;  %s2897_s28 = sld [smem:[#allocation35_spill]] }
  0x59   : > { %749 = vmatpush.msra.mxu1 %v722_v10  ;;  %701 = vmatpush.msra.mxu0 %v665_v3  ;;  %680 = vst [vmem:[#allocation1 + $0x2] ss:$4 sm:$0xff] %v2557_v8  ;;  %v2577_v17 = vld [vmem:[#allocation15 + $0x18] sm:$0xff]  ;;  %v719_v18 = vld [vmem:[#allocation11] sm:$0xff]  ;;  %v2582_v22 = vld [vmem:[#allocation15 + $0x10] sm:$0xff]  ;;  %s1271_s7 = sadd.s32 2, %s2568_s6 }
  0x5a   : > { %682 = vst [vmem:[#allocation1 + $0x3] ss:$4 sm:$0xff] %v2560_v9  ;;  %861 = vmatpush.msra.mxu3 %v2563_v11  ;;  %v2575_v16 = vld [vmem:[#allocation2] sm:$0x3]  ;;  %v771_v19 = vld [vmem:[#allocation12 + $0x18] sm:$0xff]  ;;  %v2590_v24 = vld [vmem:[#allocation15 + $0x8] sm:$0xff] }
  0x5b   : > { %750 = vmatpush.msra.mxu1 %v721_v13  ;;  %702 = vmatpush.msra.mxu0 %v664_v12  ;;  %v2584_v23 = vld [vmem:[#allocation17 + $0x18] sm:$0xff]  ;;  %v770_v25 = vld [vmem:[#allocation12 + $0x10] sm:$0xff]  ;;  %v2595_v26 = vld [vmem:[%s2850_s1] sm:$0x3]  ;;  %s1426_s25 = sadd.s32 3, %s2568_s6  ;;  %s2898_s14 = sld [smem:[#allocation36_spill]] }
  0x5c   : > { %862 = vmatpush.msra.mxu3 %v2571_v14  ;;  %v2597_v27 = vld [vmem:[#allocation15] sm:$0xff]  ;;  %798 = vmatpush.msra.mxu2 %v771_v19  ;;  %v2599_v28 = vld [vmem:[#allocation17 + $0x10] sm:$0xff]  ;;  %vm958_vm2 = vcmp.lt.s32.totalorder %v957_v21, %v2595_v26  ;;  %v769_v29 = vld [vmem:[#allocation12 + $0x8] sm:$0xff]  ;;  %vm1118_vm3 = vcmp.lt.s32.totalorder %v1117_v31, %v2595_v26  ;;  %s2899_s4 = sld [smem:[#allocation37_spill]]  ;;  %p1727_p1 = scmp.ne.s32.totalorder %s2262_s21, 1 }
  0x5d   : > { %751 = vmatpush.msra.mxu1 %v720_v15  ;;  %1701 = vmatmul.msk.f32.vlgmr.msra.gmra.mxu3 %vm684_vm1, %v2575_v16  ;;  %v959_v30 = vsel %vm958_vm2, 1, %v2283_v20  ;;  %v2605_v32 = vld [vmem:[#allocation17 + $0x8] sm:$0xff]  ;;  %v768_v34 = vld [vmem:[#allocation12] sm:$0xff]  ;;  %v1119_v36 = vsel %vm1118_vm3, 1, %v2283_v20 }
  0x5e   : > { %879 = vmatpush.msrb.mxu0 %v2577_v17  ;;  %799 = vmatpush.msra.mxu2 %v770_v25  ;;  %v2611_v35 = vld [vmem:[#allocation17] sm:$0xff]  ;;  %v1878_v39 = vld [vmem:[%s2857_s8] ss:$0 sm:$0xff] }
  0x5f   : > { %752 = vmatpush.msra.mxu1 %v719_v18  ;;  %961 = vperm.xlu0 %1876, %v959_v30   ;;  %v1879_v45 = vld [vmem:[%s2858_s9] ss:$0 sm:$0xff] }
  0x60   : > { %880 = vmatpush.msrb.mxu0 %v2582_v22  ;;  %800 = vmatpush.msra.mxu2 %v769_v29  ;;  %v1880_v61 = vld [vmem:[%s2896_s12] ss:$0 sm:$0xff] }
  0x61   : > { %899 = vmatpush.msrb.mxu1 %v2584_v23  ;;  %v683_v33 = vld.sshfl [vmem:[#allocation1] sm:$0xff pattern:$0x73625140]  ;;  %1035 = vmatpush.msrb.mxu3 %v2577_v17 }
  0x62   : > { %881 = vmatpush.msrb.mxu0 %v2590_v24  ;;  %727 = vst [vmem:[#allocation1] ss:$4 sm:$0xff] %v2551_v6  ;;  %801 = vmatpush.msra.mxu2 %v768_v34 }
  0x63   : > { %900 = vmatpush.msrb.mxu1 %v2599_v28  ;;  %1697 = vmatmul.msk.f32.vlgmr.msra.gmra.mxu0 %vm684_vm1, %v683_v33  ;;  %729 = vst [vmem:[#allocation1 + $0x1] ss:$4 sm:$0xff] %v2554_v7 }
  0x64   : > { %882 = vmatpush.msrb.mxu0 %v2597_v27  ;;  %731 = vst [vmem:[#allocation1 + $0x2] ss:$4 sm:$0xff] %v2557_v8  ;;  %1015 = vmatpush.msrb.mxu2 %v2545_v4 }
  0x65   : > { %901 = vmatpush.msrb.mxu1 %v2605_v32  ;;  %733 = vst [vmem:[#allocation1 + $0x3] ss:$4 sm:$0xff] %v2560_v9  ;;  %1036 = vmatpush.msrb.mxu3 %v2582_v22 }
  0x66   : > { %1055 = vmatpush.msra.mxu0 %v2584_v23  ;;  %1016 = vmatpush.msrb.mxu2 %v2547_v5 }
  0x67   : > { %902 = vmatpush.msrb.mxu1 %v2611_v35  ;;  %1121 = vperm.xlu0 %1876, %v1119_v36  }
  0x68   : > { %1056 = vmatpush.msra.mxu0 %v2599_v28  ;;  %1017 = vmatpush.msrb.mxu2 %v2563_v11 }
  0x69   : > { %1037 = vmatpush.msrb.mxu3 %v2590_v24 }
  0x6a   : > { %1057 = vmatpush.msra.mxu0 %v2605_v32  ;;  %1018 = vmatpush.msrb.mxu2 %v2571_v14 }
  0x6b   : > { %1702 = vmatmul.msk.f32.vlgmr.msrb.gmra.mxu0 %vm684_vm1, %v2575_v16  ;;  %1038 = vmatpush.msrb.mxu3 %v2597_v27 }
  0x6c   : > { %v734_v37 = vld.sshfl [vmem:[#allocation1] sm:$0xff pattern:$0x73625140]  ;;  %1058 = vmatpush.msra.mxu0 %v2611_v35 }
  0x6d   : > { %1698 = vmatmul.msk.f32.vlgmr.msra.gmra.mxu1 %vm684_vm1, %v734_v37  ;;  %776 = vst [vmem:[#allocation1] ss:$4 sm:$0xff] %v2551_v6  ;;  %1210 = vmatpush.msra.mxu3 %v2584_v23 }
  0x6e   : > { %778 = vst [vmem:[#allocation1 + $0x1] ss:$4 sm:$0xff] %v2554_v7  ;;  %1170 = vmatpush.msra.mxu1 %v2545_v4  ;;  %1325 = vmatpush.msrb.mxu0 %v2545_v4  ;;  %v2686_v7 = vld [vmem:[%s2897_s28] ss:$0 sm:$0xff] }
  0x6f   : > { %780 = vst [vmem:[#allocation1 + $0x2] ss:$4 sm:$0xff] %v2557_v8  ;;  %1211 = vmatpush.msra.mxu3 %v2599_v28 }
  0x70   : > { %782 = vst [vmem:[#allocation1 + $0x3] ss:$4 sm:$0xff] %v2560_v9  ;;  %1171 = vmatpush.msra.mxu1 %v2547_v5  ;;  %1326 = vmatpush.msrb.mxu0 %v2547_v5 }
  0x71   : > { %1212 = vmatpush.msra.mxu3 %v2605_v32 }
  0x72   : > { %1172 = vmatpush.msra.mxu1 %v2563_v11  ;;  %1327 = vmatpush.msrb.mxu0 %v2563_v11 }
  0x73   : > { %1213 = vmatpush.msra.mxu3 %v2611_v35 }
  0x74   : > { %1173 = vmatpush.msra.mxu1 %v2571_v14  ;;  %1328 = vmatpush.msrb.mxu0 %v2571_v14 }
  0x75   : > { %1703 = vmatmul.msk.f32.vlgmr.msrb.gmra.mxu1 %vm684_vm1, %v2575_v16 }
  0x76   : > { %1345 = vmatpush.msrb.mxu1 %v2577_v17 }
  0x77   : > { %v783_v38 = vld.sshfl [vmem:[#allocation1] sm:$0xff pattern:$0x73625140] }
  0x78   : > { %1699 = vmatmul.msk.f32.vlgmr.msra.gmra.mxu2 %vm684_vm1, %v783_v38  ;;  %1346 = vmatpush.msrb.mxu1 %v2582_v22 }
  0x79   : > { %1190 = vmatpush.msra.mxu2 %v2577_v17 }
  0x7a   : > { %1347 = vmatpush.msrb.mxu1 %v2590_v24 }
  0x7b   : > { %1191 = vmatpush.msra.mxu2 %v2582_v22 }
  0x7c   : > { %1348 = vmatpush.msrb.mxu1 %v2597_v27 }
  0x7d   : > { %1192 = vmatpush.msra.mxu2 %v2590_v24 }
  0x7f   : > { %1193 = vmatpush.msra.mxu2 %v2597_v27 }
  0xe0   : > { %v704_v40 = vpop.f32.mrf.mxu0  ;;  %v864_v46 = vpop.f32.mrf.mxu3 }
  0xe1   : > { %v705_v41 = vadd.f32 %v1878_v39, %v704_v40  ;;  %v962_v40 = vpop.permute.xlu0 %961 }
  0xe2   : > { %vm963_vm13 = vcmp.eq.s32.totalorder %v962_v40, 1 }
  0xe3   : > { %v708_v42 = vrot.slane %v705_v41, 2  ;;  %v709_v43 = vrot.slane %v705_v41, 4  ;;  %v710_v44 = vrot.slane %v705_v41, 6  ;;  %715 = vst.msk [vmem:[#allocation3] sm:$0x3] %vm714_vm4, %v705_v41 }
  0xe5   : > { %716 = vst.msk [vmem:[#allocation3 + $0x2] sm:$0x3] %vm714_vm4, %v708_v42 }
  0xe6   : > { %717 = vst.msk [vmem:[#allocation3 + $0x4] sm:$0x3] %vm714_vm4, %v709_v43 }
  0xe7   : > { %718 = vst.msk [vmem:[#allocation3 + $0x6] sm:$0x3] %vm714_vm4, %v710_v44 }
  0xe8   : > { %v884_v55 = vpop.f32.mrf.mxu0 }
  0xea   : > { %v907_v47 = vld [vmem:[#allocation3] sm:$0x3]  ;;  %v754_v48 = vpop.f32.mrf.mxu1 }
  0xeb   : > { %v908_v49 = vadd.f32 %v907_v47, %v864_v46  ;;  %v755_v50 = vadd.f32 %v1879_v45, %v754_v48 }
  0xec   : > { %v1064_v47 = vld [vmem:[#allocation3 + $0x2] sm:$0x3] }
  0xed   : > { %v1704_v51 = vmul.f32 -1.442695, %v908_v49  ;;  %v758_v52 = vrot.slane %v755_v50, 2  ;;  %v759_v53 = vrot.slane %v755_v50, 4  ;;  %v760_v54 = vrot.slane %v755_v50, 6 }
  0xee   : > { %764 = vst.msk [vmem:[#allocation4] sm:$0x3] %vm714_vm4, %v755_v50 }
  0xef   : > { %1884 = vpow2.f32 %v1704_v51  ;;  %765 = vst.msk [vmem:[#allocation4 + $0x2] sm:$0x3] %vm714_vm4, %v758_v52 }
  0xf0   : > { %766 = vst.msk [vmem:[#allocation4 + $0x4] sm:$0x3] %vm714_vm4, %v759_v53 }
  0xf1   : > { %767 = vst.msk [vmem:[#allocation4 + $0x6] sm:$0x3] %vm714_vm4, %v760_v54 }
  0xf2   : > { %v904_v9 = vpop.f32.mrf.mxu1 }
  0xf3   : > { %v905_v13 = vadd.f32 %v2686_v7, %v904_v9 }
  0xf5   : > { %v1885_v56 = vpop.eup %1884  ;;  %v928_v57 = vld [vmem:[#allocation4] sm:$0x3] }
  0xf6   : > { %v912_v58 = vadd.f32 1.0, %v1885_v56  ;;  %v929_v59 = vadd.f32 %v928_v57, %v884_v55  ;;  %v1086_v49 = vld [vmem:[#allocation4 + $0x2] sm:$0x3] }
  0xf8   : > { %1886 = vrcp.f32 %v912_v58  ;;  %v1705_v60 = vmul.f32 -1.442695, %v929_v59  ;;  %v924_v10 = vand.u32 2147483648, %v912_v58  ;;  %v922_v12 = vand.u32 2147483647, %v912_v58 }
  0xf9   : > { %vm918_vm6 = vweird.f32 %v912_v58 }
  0xfa   : > { %1888 = vpow2.f32 %v1705_v60  ;;  %v925_v15 = vor.u32 1.1754944e-38, %v924_v10  ;;  %vm923_vm8 = vcmp.eq.f32.partialorder %v922_v12, 8.507059e+37 }
  0xfb   : > { %v803_v62 = vpop.f32.mrf.mxu2 }
  0xfc   : > { %v804_v63 = vadd.f32 %v1880_v61, %v803_v62 }
  0xfe   : > { %v1887_v0 = vpop.eup %1886  ;;  %v807_v1 = vrot.slane %v804_v63, 2  ;;  %v808_v2 = vrot.slane %v804_v63, 4  ;;  %v809_v3 = vrot.slane %v804_v63, 6  ;;  %813 = vst.msk [vmem:[#allocation5] sm:$0x3] %vm714_vm4, %v804_v63 }
  0xff   : > { %v914_v4 = vmul.f32 %v1887_v0, %v912_v58  ;;  %vm919_vm5 = vweird.f32 %v1887_v0 }
 0x100   : > { %v1889_v5 = vpop.eup %1888  ;;  %814 = vst.msk [vmem:[#allocation5 + $0x2] sm:$0x3] %vm714_vm4, %v807_v1  ;;  %vm920_vm7 = vmor %vm918_vm6, %vm919_vm5 }
 0x101   : > { %v933_v6 = vadd.f32 1.0, %v1889_v5  ;;  %v915_v8 = vsub.f32 1.0, %v914_v4  ;;  %815 = vst.msk [vmem:[#allocation5 + $0x4] sm:$0x3] %vm714_vm4, %v808_v2 }
 0x102   : > { %816 = vst.msk [vmem:[#allocation5 + $0x6] sm:$0x3] %vm714_vm4, %v809_v3 }
 0x103   : > { %1890 = vrcp.f32 %v933_v6  ;;  %v916_v11 = vmul.f32 %v1887_v0, %v915_v8  ;;  %v945_v29 = vand.u32 2147483648, %v933_v6  ;;  %v943_v31 = vand.u32 2147483647, %v933_v6 }
 0x104   : > { %vm939_vm10 = vweird.f32 %v933_v6 }
 0x105   : > { %v917_v14 = vadd.f32 %v1887_v0, %v916_v11  ;;  %v949_v19 = vld [vmem:[#allocation5] sm:$0x3]  ;;  %v946_v34 = vor.u32 1.1754944e-38, %v945_v29  ;;  %vm944_vm12 = vcmp.eq.f32.partialorder %v943_v31, 8.507059e+37 }
 0x107   : > { %v921_v17 = vsel %vm920_vm7, %v1887_v0, %v917_v14  ;;  %v1272_v0 = vstv %s1271_s7 }
 0x108   : > { %v926_v18 = vsel %vm923_vm8, %v925_v15, %v921_v17  ;;  %vm1273_vm15 = vcmp.lt.s32.totalorder %v1272_v0, %v2595_v26 }
 0x109   : > { %v1891_v21 = vpop.eup %1890  ;;  %v950_v22 = vmul.f32 %v926_v18, %v905_v13  ;;  %v1274_v5 = vsel %vm1273_vm15, 1, %v2283_v20 }
 0x10a   : > { %v935_v24 = vmul.f32 %v1891_v21, %v933_v6  ;;  %vm940_vm9 = vweird.f32 %v1891_v21  ;;  %v1427_v6 = vstv %s1426_s25  ;;  %1276 = vperm.xlu1 %1877, %v1274_v5  }
 0x10b   : > { %v951_v25 = vadd.f32 %v950_v22, %v949_v19  ;;  %vm941_vm11 = vmor %vm939_vm10, %vm940_vm9  ;;  %vm1428_vm5 = vcmp.lt.s32.totalorder %v1427_v6, %v2595_v26 }
 0x10c   : > { %v936_v27 = vsub.f32 1.0, %v935_v24  ;;  %v1429_v22 = vsel %vm1428_vm5, 1, %v2283_v20 }
 0x10d   : > { %1892 = vtanh.f32 %v951_v25 }
 0x10e   : > { %v937_v30 = vmul.f32 %v1891_v21, %v936_v27 }
 0x110   : > { %v938_v33 = vadd.f32 %v1891_v21, %v937_v30 }
 0x112   : > { %v942_v36 = vsel %vm941_vm11, %v1891_v21, %v938_v33  ;;  %v1108_v21 = vld [vmem:[#allocation5 + $0x2] sm:$0x3]  ;;  %1431 = vperm.xlu1 %1877, %v1429_v22  }
 0x113   : > { %v1893_v37 = vpop.eup %1892  ;;  %v947_v38 = vsel %vm944_vm12, %v946_v34, %v942_v36  ;;  %v1122_v36 = vpop.permute.xlu0 %1121 }
 0x114   : > { %v953_v39 = vsub.f32 1.0, %v947_v38  ;;  %v955_v42 = vmul.f32 %v947_v38, %v2575_v16  ;;  %vm1123_vm11 = vcmp.eq.s32.totalorder %v1122_v36, 1 }
 0x116   : > { %v954_v41 = vmul.f32 %v1893_v37, %v953_v39 }
 0x118   : > { %v956_v43 = vadd.f32 %v955_v42, %v954_v41 }
 0x11a   : > { %v2693_v44 = vsel %vm963_vm13, %v956_v43, %v2575_v16  ;;  %v2695_v45 = vsel %vm963_vm13, %v956_v43, 0.0 }
 0x11b   : > { %1706 = vmatmul.msk.f32.vlgmr.msrb.gmra.mxu2 %vm684_vm1, %v2693_v44  ;;  %1707 = vmatmul.msk.f32.vlgmr.msrb.gmra.mxu3 %vm684_vm1, %v2693_v44  ;;  %v966_v46 = vsel %vm714_vm4, %v2695_v45, 0.0 }
 0x11c   : > { %1708 = vmatmul.msk.f32.vlgmr.msra.gmra.mxu0 %vm684_vm1, %v2693_v44  ;;  %967 = vadd.xlane.f32.xlu2 %v966_v46 }
 0x11d   : > { %1365 = vmatpush.msrb.mxu2 %v2584_v23 }
 0x11f   : > { %1366 = vmatpush.msrb.mxu2 %v2599_v28  ;;  %v2284_v28 = vmov 32.0  }
 0x121   : > { %1367 = vmatpush.msrb.mxu2 %v2605_v32 }
 0x123   : > { %1368 = vmatpush.msrb.mxu2 %v2611_v35 }
 0x18f   : > { %v968_v31 = vpop.xlane.xlu2 %967 }
 0x199   : > { %v1060_v3 = vpop.f32.mrf.mxu0 }
 0x19a   : > { %v1061_v11 = vadd.f32 %v2686_v7, %v1060_v3 }
 0x19e   : > { %v1020_v16 = vpop.f32.mrf.mxu2  ;;  %v1040_v48 = vpop.f32.mrf.mxu3 }
 0x19f   : > { %v1065_v50 = vadd.f32 %v1064_v47, %v1020_v16  ;;  %v1087_v51 = vadd.f32 %v1086_v49, %v1040_v48 }
 0x1a1   : > { %v1709_v52 = vmul.f32 -1.442695, %v1065_v50  ;;  %v1710_v53 = vmul.f32 -1.442695, %v1087_v51 }
 0x1a3   : > { %1894 = vpow2.f32 %v1709_v52 }
 0x1a4   : > { %1896 = vpow2.f32 %v1710_v53  ;;  %v1219_v53 = vld [vmem:[#allocation3 + $0x4] sm:$0x3] }
 0x1a5   : > { %1898 = vrcp.f32 %v2284_v28 }
 0x1a9   : > { %v1895_v54 = vpop.eup %1894 }
 0x1aa   : > { %v1897_v23 = vpop.eup %1896  ;;  %v1069_v55 = vadd.f32 1.0, %v1895_v54 }
 0x1ab   : > { %v1091_v32 = vadd.f32 1.0, %v1897_v23  ;;  %v1899_v35 = vpop.eup %1898 }
 0x1ac   : > { %1900 = vrcp.f32 %v1069_v55  ;;  %v970_v61 = vmul.f32 32.0, %v1899_v35  ;;  %v1081_v62 = vand.u32 2147483648, %v1069_v55  ;;  %v1079_v2 = vand.u32 2147483647, %v1069_v55 }
 0x1ad   : > { %1902 = vrcp.f32 %v1091_v32  ;;  %vm1075_vm0 = vweird.f32 %v1069_v55  ;;  %v1103_v17 = vand.u32 2147483648, %v1091_v32  ;;  %vm1097_vm7 = vweird.f32 %v1091_v32 }
 0x1ae   : > { %v971_v9 = vsub.f32 1.0, %v970_v61  ;;  %v1082_v10 = vor.u32 1.1754944e-38, %v1081_v62  ;;  %vm1080_vm3 = vcmp.eq.f32.partialorder %v1079_v2, 8.507059e+37  ;;  %v1101_v19 = vand.u32 2147483647, %v1091_v32 }
 0x1af   : > { %v1104_v27 = vor.u32 1.1754944e-38, %v1103_v17  ;;  %vm974_vm10 = vweird.f32 %v1899_v35 }
 0x1b0   : > { %v972_v18 = vmul.f32 %v1899_v35, %v971_v9  ;;  %vm1102_vm9 = vcmp.eq.f32.partialorder %v1101_v19, 8.507059e+37 }
 0x1b2   : > { %v1901_v56 = vpop.eup %1900  ;;  %v973_v29 = vadd.f32 %v1899_v35, %v972_v18 }
 0x1b3   : > { %v1903_v57 = vpop.eup %1902  ;;  %v1071_v58 = vmul.f32 %v1901_v56, %v1069_v55  ;;  %vm1076_vm14 = vweird.f32 %v1901_v56 }
 0x1b4   : > { %v1093_v59 = vmul.f32 %v1903_v57, %v1091_v32  ;;  %vm1077_vm2 = vmor %vm1075_vm0, %vm1076_vm14  ;;  %vm1098_vm6 = vweird.f32 %v1903_v57  ;;  %v2716_v30 = vsel %vm974_vm10, %v1899_v35, %v973_v29  ;;  %v1241_v32 = vld [vmem:[#allocation4 + $0x4] sm:$0x3] }
 0x1b5   : > { %v1072_v60 = vsub.f32 1.0, %v1071_v58  ;;  %vm1099_vm8 = vmor %vm1097_vm7, %vm1098_vm6  ;;  %v976_v20 = vmul.f32 %v2716_v30, %v968_v31 }
 0x1b6   : > { %v1094_v63 = vsub.f32 1.0, %v1093_v59 }
 0x1b7   : > { %v1073_v1 = vmul.f32 %v1901_v56, %v1072_v60  ;;  %v977_v42 = vsub.f32 %v2695_v45, %v976_v20 }
 0x1b8   : > { %v1095_v4 = vmul.f32 %v1903_v57, %v1094_v63 }
 0x1b9   : > { %v1074_v8 = vadd.f32 %v1901_v56, %v1073_v1  ;;  %v978_v46 = vmul.f32 %v977_v42, %v977_v42 }
 0x1ba   : > { %v1096_v14 = vadd.f32 %v1903_v57, %v1095_v4  ;;  %v2742_v4 = vld [vmem:[%s2898_s14] ss:$0 sm:$0xff] }
 0x1bb   : > { %v1078_v12 = vsel %vm1077_vm2, %v1901_v56, %v1074_v8  ;;  %v979_v16 = vsel %vm714_vm4, %v978_v46, 0.0  ;;  %v2747_v8 = vld [vmem:[%s2899_s4] ss:$0 sm:$0xff] }
 0x1bc   : > { %v1083_v13 = vsel %vm1080_vm3, %v1082_v10, %v1078_v12  ;;  %v1100_v25 = vsel %vm1099_vm8, %v1903_v57, %v1096_v14 }
 0x1bd   : > { %v1109_v15 = vmul.f32 %v1083_v13, %v1061_v11  ;;  %v1105_v26 = vsel %vm1102_vm9, %v1104_v27, %v1100_v25  ;;  %v997_v13 = vld [vmem:[%s2524_s5] sm:$0x3] }
 0x1be   : > { %v1112_v33 = vsub.f32 1.0, %v1105_v26  ;;  %v1114_v38 = vmul.f32 %v1105_v26, %v2693_v44 }
 0x1bf   : > { %v1110_v24 = vadd.f32 %v1109_v15, %v1108_v21 }
 0x1c1   : > { %1904 = vtanh.f32 %v1110_v24 }
 0x1c7   : > { %v1905_v34 = vpop.eup %1904 }
 0x1c8   : > { %v1113_v37 = vmul.f32 %v1905_v34, %v1112_v33 }
 0x1ca   : > { %v1115_v39 = vadd.f32 %v1114_v38, %v1113_v37  ;;  %v1263_v37 = vld [vmem:[#allocation5 + $0x4] sm:$0x3] }
 0x1cc   : > { %v2721_v40 = vsel %vm1123_vm11, %v1115_v39, %v2693_v44  ;;  %v1125_v41 = vsel %vm1123_vm11, %v1115_v39, 0.0 }
 0x1cd   : > { %1713 = vmatmul.msk.f32.vlgmr.msra.gmra.mxu1 %vm684_vm1, %v2721_v40  ;;  %1714 = vmatmul.msk.f32.vlgmr.msra.gmra.mxu2 %vm684_vm1, %v2721_v40  ;;  %v1126_v43 = vsel %vm714_vm4, %v1125_v41, 0.0 }
 0x1ce   : > { %1715 = vmatmul.msk.f32.vlgmr.msra.gmra.mxu3 %vm684_vm1, %v2721_v40  ;;  %1127 = vadd.xlane.f32.xlu2 %v1126_v43 }
 0x1d6   : > { %980 = vadd.xlane.f32.xlu2 %v979_v16 }
 0x241   : > { %v1128_v44 = vpop.xlane.xlu2 %1127 }
 0x242   : > { %v1129_v47 = vmul.f32 %v1128_v44, %v2716_v30  ;;  %v1277_v44 = vpop.permute.xlu1 %1276 }
 0x243   : > { %vm1278_vm9 = vcmp.eq.s32.totalorder %v1277_v44, 1 }
 0x244   : > { %v2733_v45 = vsub.f32 %v1125_v41, %v1129_v47 }
 0x246   : > { %v1131_v48 = vmul.f32 %v2733_v45, %v2733_v45 }
 0x248   : > { %v1132_v49 = vsel %vm714_vm4, %v1131_v48, 0.0 }
 0x249   : > { %1133 = vadd.xlane.f32.xlu2 %v1132_v49  ;;  %v981_v50 = vpop.xlane.xlu2 %980 }
 0x24a   : > { %v982_v51 = vmul.f32 %v981_v50, %v2716_v30  ;;  %v1175_v52 = vpop.f32.mrf.mxu1 }
 0x24b   : > { %v1220_v54 = vadd.f32 %v1219_v53, %v1175_v52 }
 0x24c   : > { %v983_v23 = vadd.f32 1e-05, %v982_v51 }
 0x24d   : > { %v1716_v55 = vmul.f32 -1.442695, %v1220_v54 }
 0x24e   : > { %1906 = vrsqrt.f32 %v983_v23  ;;  %vm990_vm13 = vweird.f32 %v983_v23 }
 0x24f   : > { %1908 = vpow2.f32 %v1716_v55 }
 0x250   : > { %v1195_v28 = vpop.f32.mrf.mxu2 }
 0x251   : > { %v1242_v35 = vadd.f32 %v1241_v32, %v1195_v28  ;;  %v1215_v19 = vpop.f32.mrf.mxu3 }
 0x252   : > { %v1216_v29 = vadd.f32 %v2686_v7, %v1215_v19 }
 0x253   : > { %v1717_v56 = vmul.f32 -1.442695, %v1242_v35 }
 0x254   : > { %v1907_v57 = vpop.eup %1906 }
 0x255   : > { %v1909_v58 = vpop.eup %1908  ;;  %v985_v59 = vmul.f32 %v1907_v57, %v983_v23  ;;  %1910 = vpow2.f32 %v1717_v56  ;;  %vm991_vm12 = vweird.f32 %v1907_v57 }
 0x256   : > { %v1224_v60 = vadd.f32 1.0, %v1909_v58  ;;  %vm992_vm14 = vmor %vm990_vm13, %vm991_vm12 }
 0x257   : > { %v986_v61 = vmul.f32 %v1907_v57, %v985_v59 }
 0x258   : > { %1912 = vrcp.f32 %v1224_v60  ;;  %v1236_v12 = vand.u32 2147483648, %v1224_v60  ;;  %v1234_v15 = vand.u32 2147483647, %v1224_v60  ;;  %vm1230_vm0 = vweird.f32 %v1224_v60 }
 0x259   : > { %v987_v62 = vmul.f32 0.5, %v986_v61 }
 0x25a   : > { %v1237_v25 = vor.u32 1.1754944e-38, %v1236_v12  ;;  %vm1235_vm3 = vcmp.eq.f32.partialorder %v1234_v15, 8.507059e+37 }
 0x25b   : > { %v1911_v63 = vpop.eup %1910  ;;  %v988_v0 = vsub.f32 1.5, %v987_v62 }
 0x25c   : > { %v1246_v1 = vadd.f32 1.0, %v1911_v63 }
 0x25d   : > { %v989_v2 = vmul.f32 %v1907_v57, %v988_v0 }
 0x25e   : > { %v1913_v3 = vpop.eup %1912  ;;  %1914 = vrcp.f32 %v1246_v1  ;;  %v1258_v36 = vand.u32 2147483648, %v1246_v1  ;;  %v1256_v38 = vand.u32 2147483647, %v1246_v1  ;;  %vm1252_vm6 = vweird.f32 %v1246_v1 }
 0x25f   : > { %v993_v5 = vsel %vm992_vm14, %v1907_v57, %v989_v2  ;;  %v1226_v6 = vmul.f32 %v1913_v3, %v1224_v60  ;;  %vm1231_vm15 = vweird.f32 %v1913_v3  ;;  %v1711_v60 = vld [vmem:[%s2524_s5 + $0x2] sm:$0x3] }
 0x260   : > { %v994_v9 = vmul.f32 %v993_v5, %v977_v42  ;;  %vm1232_vm2 = vmor %vm1230_vm0, %vm1231_vm15  ;;  %v1259_v42 = vor.u32 1.1754944e-38, %v1258_v36  ;;  %vm1257_vm8 = vcmp.eq.f32.partialorder %v1256_v38, 8.507059e+37  ;;  %v1374_v5 = vld [vmem:[#allocation3 + $0x6] sm:$0x3] }
 0x261   : > { %v1227_v10 = vsub.f32 1.0, %v1226_v6 }
 0x262   : > { %v995_v11 = vmul.f32 %v2742_v4, %v994_v9  ;;  %v1396_v9 = vld [vmem:[#allocation4 + $0x6] sm:$0x3] }
 0x263   : > { %v1228_v14 = vmul.f32 %v1913_v3, %v1227_v10 }
 0x264   : > { %v1915_v17 = vpop.eup %1914  ;;  %v996_v18 = vadd.f32 %v2747_v8, %v995_v11 }
 0x265   : > { %v1248_v21 = vmul.f32 %v1915_v17, %v1246_v1  ;;  %v1229_v22 = vadd.f32 %v1913_v3, %v1228_v14  ;;  %vm1253_vm5 = vweird.f32 %v1915_v17 }
 0x266   : > { %v998_v24 = vadd.f32 %v997_v13, %v996_v18  ;;  %vm1254_vm7 = vmor %vm1252_vm6, %vm1253_vm5 }
 0x267   : > { %v1249_v27 = vsub.f32 1.0, %v1248_v21  ;;  %v1233_v26 = vsel %vm1232_vm2, %v1913_v3, %v1229_v22 }
 0x268   : > { %999 = vst.msk [vmem:[%s2542_s3] sm:$0x3] %vm714_vm4, %v998_v24  ;;  %v1238_v31 = vsel %vm1235_vm3, %v1237_v25, %v1233_v26 }
 0x269   : > { %v1250_v33 = vmul.f32 %v1915_v17, %v1249_v27  ;;  %v1264_v34 = vmul.f32 %v1238_v31, %v1216_v29 }
 0x26b   : > { %v1265_v20 = vadd.f32 %v1264_v34, %v1263_v37  ;;  %v1251_v39 = vadd.f32 %v1915_v17, %v1250_v33 }
 0x26d   : > { %1916 = vtanh.f32 %v1265_v20  ;;  %v1255_v41 = vsel %vm1254_vm7, %v1915_v17, %v1251_v39 }
 0x26e   : > { %v1260_v43 = vsel %vm1257_vm8, %v1259_v42, %v1255_v41 }
 0x26f   : > { %v1267_v46 = vsub.f32 1.0, %v1260_v43  ;;  %v1269_v48 = vmul.f32 %v1260_v43, %v2721_v40 }
 0x273   : > { %v1917_v16 = vpop.eup %1916 }
 0x274   : > { %v1268_v47 = vmul.f32 %v1917_v16, %v1267_v46  ;;  %v1418_v46 = vld [vmem:[#allocation5 + $0x6] sm:$0x3] }
 0x276   : > { %v1270_v49 = vadd.f32 %v1269_v48, %v1268_v47 }
 0x278   : > { %v2757_v50 = vsel %vm1278_vm9, %v1270_v49, %v2721_v40  ;;  %v1280_v51 = vsel %vm1278_vm9, %v1270_v49, 0.0 }
 0x279   : > { %1720 = vmatmul.msk.f32.vlgmr.msrb.gmra.mxu0 %vm684_vm1, %v2757_v50  ;;  %1721 = vmatmul.msk.f32.vlgmr.msrb.gmra.mxu1 %vm684_vm1, %v2757_v50  ;;  %v1281_v52 = vsel %vm714_vm4, %v1280_v51, 0.0 }
 0x27a   : > { %1722 = vmatmul.msk.f32.vlgmr.msrb.gmra.mxu2 %vm684_vm1, %v2757_v50  ;;  %1282 = vadd.xlane.f32.xlu0 %v1281_v52 }
 0x2bc   : > { %v1134_v53 = vpop.xlane.xlu2 %1133 }
 0x2bd   : > { %v1135_v54 = vmul.f32 %v1134_v53, %v2716_v30 }
 0x2bf   : > { %v1136_v23 = vadd.f32 1e-05, %v1135_v54 }
 0x2c1   : > { %1918 = vrsqrt.f32 %v1136_v23  ;;  %vm1143_vm11 = vweird.f32 %v1136_v23 }
 0x2c7   : > { %v1919_v40 = vpop.eup %1918 }
 0x2c8   : > { %v1138_v55 = vmul.f32 %v1919_v40, %v1136_v23  ;;  %vm1144_vm10 = vweird.f32 %v1919_v40 }
 0x2c9   : > { %vm1145_vm12 = vmor %vm1143_vm11, %vm1144_vm10 }
 0x2ca   : > { %v1139_v28 = vmul.f32 %v1919_v40, %v1138_v55 }
 0x2cc   : > { %v1140_v32 = vmul.f32 0.5, %v1139_v28 }
 0x2ce   : > { %v1141_v35 = vsub.f32 1.5, %v1140_v32 }
 0x2d0   : > { %v1142_v56 = vmul.f32 %v1919_v40, %v1141_v35 }
 0x2d2   : > { %v1146_v57 = vsel %vm1145_vm12, %v1919_v40, %v1142_v56 }
 0x2d3   : > { %v1147_v58 = vmul.f32 %v1146_v57, %v2733_v45 }
 0x2d5   : > { %v1148_v59 = vmul.f32 %v2742_v4, %v1147_v58 }
 0x2d7   : > { %v1149_v61 = vadd.f32 %v2747_v8, %v1148_v59 }
 0x2d9   : > { %v1152_v62 = vadd.f32 %v1711_v60, %v1149_v61 }
 0x2db   : > { %1712 = vst.msk [vmem:[%s2542_s3 + $0x2] sm:$0x3] %vm714_vm4, %v1152_v62 }
 0x2ed   : > { %v1283_v63 = vpop.xlane.xlu0 %1282 }
 0x2ee   : > { %v1284_v0 = vmul.f32 %v1283_v63, %v2716_v30 }
 0x2f0   : > { %v2774_v1 = vsub.f32 %v1280_v51, %v1284_v0 }
 0x2f2   : > { %v1286_v2 = vmul.f32 %v2774_v1, %v2774_v1 }
 0x2f4   : > { %v1287_v3 = vsel %vm714_vm4, %v1286_v2, 0.0  ;;  %v1718_v2 = vld [vmem:[%s2524_s5 + $0x4] sm:$0x3] }
 0x2f5   : > { %1288 = vadd.xlane.f32.xlu2 %v1287_v3 }
 0x2f6   : > { %v1330_v45 = vpop.f32.mrf.mxu0  ;;  %v1350_v6 = vpop.f32.mrf.mxu1 }
 0x2f7   : > { %v1375_v10 = vadd.f32 %v1374_v5, %v1330_v45  ;;  %v1397_v11 = vadd.f32 %v1396_v9, %v1350_v6 }
 0x2f9   : > { %v1723_v12 = vmul.f32 -1.442695, %v1375_v10  ;;  %v1724_v13 = vmul.f32 -1.442695, %v1397_v11 }
 0x2fb   : > { %1920 = vpow2.f32 %v1723_v12 }
 0x2fc   : > { %1922 = vpow2.f32 %v1724_v13 }
 0x2fd   : > { %v1370_v33 = vpop.f32.mrf.mxu2 }
 0x2fe   : > { %v1371_v38 = vadd.f32 %v2686_v7, %v1370_v33  ;;  %v1432_v7 = vpop.permute.xlu1 %1431 }
 0x2ff   : > { %vm1433_vm6 = vcmp.eq.s32.totalorder %v1432_v7, 1 }
 0x301   : > { %v1921_v14 = vpop.eup %1920 }
 0x302   : > { %v1923_v15 = vpop.eup %1922  ;;  %v1379_v17 = vadd.f32 1.0, %v1921_v14 }
 0x303   : > { %v1401_v18 = vadd.f32 1.0, %v1923_v15 }
 0x304   : > { %1924 = vrcp.f32 %v1379_v17  ;;  %v1391_v29 = vand.u32 2147483648, %v1379_v17  ;;  %v1389_v31 = vand.u32 2147483647, %v1379_v17  ;;  %vm1385_vm13 = vweird.f32 %v1379_v17 }
 0x305   : > { %1926 = vrcp.f32 %v1401_v18  ;;  %v1413_v43 = vand.u32 2147483648, %v1401_v18  ;;  %vm1407_vm2 = vweird.f32 %v1401_v18  ;;  %v1411_v16 = vand.u32 2147483647, %v1401_v18 }
 0x306   : > { %v1392_v37 = vor.u32 1.1754944e-38, %v1391_v29  ;;  %vm1390_vm15 = vcmp.eq.f32.partialorder %v1389_v31, 8.507059e+37 }
 0x307   : > { %v1414_v48 = vor.u32 1.1754944e-38, %v1413_v43  ;;  %vm1412_vm5 = vcmp.eq.f32.partialorder %v1411_v16, 8.507059e+37 }
 0x30a   : > { %v1925_v19 = vpop.eup %1924 }
 0x30b   : > { %v1927_v21 = vpop.eup %1926  ;;  %v1381_v22 = vmul.f32 %v1925_v19, %v1379_v17  ;;  %vm1386_vm1 = vweird.f32 %v1925_v19 }
 0x30c   : > { %v1403_v24 = vmul.f32 %v1927_v21, %v1401_v18  ;;  %vm1387_vm14 = vmor %vm1385_vm13, %vm1386_vm1  ;;  %vm1408_vm0 = vweird.f32 %v1927_v21 }
 0x30d   : > { %v1382_v25 = vsub.f32 1.0, %v1381_v22  ;;  %vm1409_vm3 = vmor %vm1407_vm2, %vm1408_vm0 }
 0x30e   : > { %v1404_v27 = vsub.f32 1.0, %v1403_v24 }
 0x30f   : > { %v1383_v26 = vmul.f32 %v1925_v19, %v1382_v25 }
 0x310   : > { %v1405_v34 = vmul.f32 %v1927_v21, %v1404_v27  ;;  %v1725_v27 = vld [vmem:[%s2524_s5 + $0x6] sm:$0x3] }
 0x311   : > { %v1384_v36 = vadd.f32 %v1925_v19, %v1383_v26 }
 0x312   : > { %v1406_v41 = vadd.f32 %v1927_v21, %v1405_v34 }
 0x313   : > { %v1388_v20 = vsel %vm1387_vm14, %v1925_v19, %v1384_v36 }
 0x314   : > { %v1393_v39 = vsel %vm1390_vm15, %v1392_v37, %v1388_v20  ;;  %v1410_v47 = vsel %vm1409_vm3, %v1927_v21, %v1406_v41 }
 0x315   : > { %v1419_v42 = vmul.f32 %v1393_v39, %v1371_v38  ;;  %v1415_v49 = vsel %vm1412_vm5, %v1414_v48, %v1410_v47 }
 0x316   : > { %v1422_v51 = vsub.f32 1.0, %v1415_v49  ;;  %v1424_v54 = vmul.f32 %v1415_v49, %v2757_v50 }
 0x317   : > { %v1420_v44 = vadd.f32 %v1419_v42, %v1418_v46 }
 0x319   : > { %1928 = vtanh.f32 %v1420_v44 }
 0x31f   : > { %v1929_v52 = vpop.eup %1928 }
 0x320   : > { %v1423_v53 = vmul.f32 %v1929_v52, %v1422_v51 }
 0x322   : > { %v1425_v23 = vadd.f32 %v1424_v54, %v1423_v53 }
 0x324   : > { %v1435_v40 = vsel %vm1433_vm6, %v1425_v23, 0.0  ;;  %v1434_v55 = vsel %vm1433_vm6, %v1425_v23, %v2757_v50 }
 0x325   : > { %v1436_v28 = vsel %vm714_vm4, %v1435_v40, 0.0  ;;  %1465 = vst.msk [vmem:[#allocation2] sm:$0x3] %vm714_vm4, %v1434_v55 }
 0x326   : > { %1437 = vadd.xlane.f32.xlu1 %v1436_v28 }
 0x368   : > { %v1289_v32 = vpop.xlane.xlu2 %1288 }
 0x369   : > { %v1290_v35 = vmul.f32 %v1289_v32, %v2716_v30 }
 0x36b   : > { %v1291_v56 = vadd.f32 1e-05, %v1290_v35 }
 0x36d   : > { %1930 = vrsqrt.f32 %v1291_v56  ;;  %vm1298_vm8 = vweird.f32 %v1291_v56 }
 0x373   : > { %v1931_v57 = vpop.eup %1930 }
 0x374   : > { %v1293_v58 = vmul.f32 %v1931_v57, %v1291_v56  ;;  %vm1299_vm7 = vweird.f32 %v1931_v57 }
 0x375   : > { %vm1300_vm9 = vmor %vm1298_vm8, %vm1299_vm7 }
 0x376   : > { %v1294_v59 = vmul.f32 %v1931_v57, %v1293_v58 }
 0x378   : > { %v1295_v60 = vmul.f32 0.5, %v1294_v59 }
 0x37a   : > { %v1296_v61 = vsub.f32 1.5, %v1295_v60 }
 0x37c   : > { %v1297_v62 = vmul.f32 %v1931_v57, %v1296_v61 }
 0x37e   : > { %v1301_v50 = vsel %vm1300_vm9, %v1931_v57, %v1297_v62 }
 0x37f   : > { %v1302_v63 = vmul.f32 %v1301_v50, %v2774_v1 }
 0x381   : > { %v1303_v0 = vmul.f32 %v2742_v4, %v1302_v63 }
 0x383   : > { %v1304_v3 = vadd.f32 %v2747_v8, %v1303_v0 }
 0x385   : > { %v1307_v45 = vadd.f32 %v1718_v2, %v1304_v3 }
 0x387   : > { %1719 = vst.msk [vmem:[%s2542_s3 + $0x4] sm:$0x3] %vm714_vm4, %v1307_v45 }
 0x399   : > { %v1438_v5 = vpop.xlane.xlu1 %1437 }
 0x39a   : > { %v1439_v6 = vmul.f32 %v1438_v5, %v2716_v30 }
 0x39c   : > { %v1440_v9 = vsub.f32 %v1435_v40, %v1439_v6 }
 0x39e   : > { %v1441_v10 = vmul.f32 %v1440_v9, %v1440_v9 }
 0x3a0   : > { %v1442_v11 = vsel %vm714_vm4, %v1441_v10, 0.0 }
 0x3a1   : > { %1443 = vadd.xlane.f32.xlu2 %v1442_v11 }
 0x414   : > { %v1444_v12 = vpop.xlane.xlu2 %1443 }
 0x415   : > { %v1445_v1 = vmul.f32 %v1444_v12, %v2716_v30 }
 0x417   : > { %v1446_v13 = vadd.f32 1e-05, %v1445_v1 }
 0x419   : > { %1932 = vrsqrt.f32 %v1446_v13  ;;  %vm1453_vm11 = vweird.f32 %v1446_v13 }
 0x41f   : > { %v1933_v14 = vpop.eup %1932 }
 0x420   : > { %v1448_v15 = vmul.f32 %v1933_v14, %v1446_v13  ;;  %vm1454_vm10 = vweird.f32 %v1933_v14 }
 0x421   : > { %vm1455_vm12 = vmor %vm1453_vm11, %vm1454_vm10 }
 0x422   : > { %v1449_v17 = vmul.f32 %v1933_v14, %v1448_v15 }
 0x424   : > { %v1450_v18 = vmul.f32 0.5, %v1449_v17 }
 0x426   : > { %v1451_v19 = vsub.f32 1.5, %v1450_v18 }
 0x428   : > { %v1452_v21 = vmul.f32 %v1933_v14, %v1451_v19 }
 0x42a   : > { %v1456_v22 = vsel %vm1455_vm12, %v1933_v14, %v1452_v21 }
 0x42b   : > { %v1457_v24 = vmul.f32 %v1456_v22, %v1440_v9 }
 0x42d   : > { %v1458_v25 = vmul.f32 %v2742_v4, %v1457_v24 }
 0x42f   : > { %v1459_v29 = vadd.f32 %v2747_v8, %v1458_v25  ;;  %1469 = sbr.rel (%p1727_p1) target bundleno = 1077 (0x435), region = 112 }
 0x431   : > { %v1462_v30 = vadd.f32 %v1725_v27, %v1459_v29 }
 0x433   : > { %1726 = vst.msk [vmem:[%s2542_s3 + $0x6] sm:$0x3] %vm714_vm4, %v1462_v30 }
 0x434   : > { %1470 = vst.msk [vmem:[#allocation19] sm:$0x3] %vm714_vm4, %v1434_v55 }
 0x435 PF: > { %s1736_s17 = sshll.u32 %s2262_s21, 3  ;;  %s2900_s16 = sld [smem:[#allocation38_spill]] }
 0x436   : > { %s1485_s27 = sshll.u32 %s2542_s3, 4  ;;  %s1472_s7 = scalar_lea.sflag [#allocation8], %s2520_s13  ;;  %s1486_s27 = int_to_ptr.vmem [resolvable:$true] %s1485_s27 }
 0x43b   : > { %s1484_s5 = scalar_lea.hbm %s2900_s16, %s1736_s17  ;;  %s2164_s21 = scalar_lea.hbm %s2900_s16, 16 }
 0x43c   : > { %s1487_s28 = sshll.u32 %s1484_s5, 4  ;;  %s1488_s28 = int_to_ptr.hbm [resolvable:$true] %s1487_s28 }
 0x43d   : > { %s2158_s25 = sshra.s32 %s1488_s28, 4  ;;  %s2159_s25 = int_to_ptr.hbm [resolvable:$true] %s2158_s25 }
 0x43e   : > { %s2160_s6 = scalar_lea.hbm %s2159_s25, 8  ;;  %p2165_p13 = scmp.lt.s32.totalorder %s2159_s25, %s2900_s16 }
 0x43f   : > { %p2161_p9 = scmp.ne.s32.totalorder %s2159_s25, %s2160_s6  ;;  %p2166_p0 = scmp.lt.s32.totalorder %s2164_s21, %s2160_s6 }
 0x441   : > { %p2162_p10 = pnand %p2161_p9, %p2498_p2  ;;  %p2167_p4 = por %p2166_p0, %p2165_p13 }
 0x443   : > { %p2163_p11 = pneg %p2162_p10 }
 0x445   : > { %p2168_p7 = pnand %p2167_p4, %p2163_p11 }
 0x447   : > { %2171 = shalt.err (!%p2168_p7)
}
 0x448   : > { %s2285_s13 = smov 32   ;;  %s2286_s3 = smov 2  }
 0x449   : > { %1763 = dma.vmem_to_hbm [thread:$0]  (%p2498_p2), %s1486_s27, 128, %s1488_s28, %s1472_s7, %s2285_s13, %s2285_s13, %s2286_s3  }
 0x44a   : > { %s2901_s2 = sld [smem:[#allocation39_spill]]  ;;  %s2287_s5 = smov [#allocation19]  }
 0x44b   : > { %s1502_s29 = sshll.u32 %s2287_s5, 4  ;;  %s1503_s29 = int_to_ptr.vmem [resolvable:$true] %s1502_s29 }
 0x450   : > { %s1504_s12 = sshll.u32 %s2901_s2, 4  ;;  %s1505_s12 = int_to_ptr.hbm [resolvable:$true] %s1504_s12 }
 0x451   : > { %1765 = dma.vmem_to_hbm [thread:$0]  (%p2486_p12), %s1503_s29, 32, %s1505_s12, [#allocation20]  }
 0x452   : > { %2241 = dma.done.wait (%p2486_p12), [#allocation20], 32  }
 0x453   : > { %2243 = vsyncadd (%p2486_p12), [#allocation20], 4294967264 }
 0x454 PF: > { %s1521_s10 = sand.u32 1, %s2250_s18   ;;  %p1793_p2 = pnand %p1683_p6, %p2505_p5 }
 0x455   : > { %s1522_s27 = scalar_lea.sflag [#allocation8], %s1521_s10 }
 0x456   : > { %p1794_p8 = pneg %p1793_p2 }
 0x458   : > { %2245 = dma.done.wait (%p1794_p8), %s1522_s27, 128  }
 0x459   : > { %2247 = vsyncadd (%p1794_p8), %s1522_s27, 4294967168  ;;  %s36_s23 = sadd.s32 1, %s2270_s23   ;;  %s2902_s15 = sld [smem:[#allocation27_spill]] }
 0x45a   : > { %p33_p3 = scmp.ge.s32.totalorder %s36_s23, 4   ;;  %s2903_s18 = smov %s2254_s19 }
 0x45b   : > { %s2904_s19 = smov %s2258_s20  ;;  %s2905_s20 = smov %s2503_s11 }
 0x45c   : > { %s2906_s21 = smov %s2266_s22  ;;  %35 = sbr.rel (!%p33_p3) target bundleno = 23 (0x17), region = 189 }
 0x45f   : > { %s2907_s22 = smov %s2902_s15 }
 0x461   :  { %1528 = vsyncpa [#allocation7], 1 }
 0x462   :  { %1530 = vsyncpa [#allocation7 + $0x1], 1 }
 0x463   :  { %1531 = vsyncpa [#allocation10], 1 }
 0x464   :  { %1532 = vsyncpa [#allocation13], 1 }
 0x465   :  { %1533 = vsyncpa [#allocation16], 1 }
 0x466   :  { %1534 = vsyncpa [#allocation8], 1 }
 0x467   :  { %1536 = vsyncpa [#allocation8 + $0x1], 1 }
 0x468   :  { %1537 = vsyncpa [#allocation20], 1 }

</bundles_post_ra>
